<compile_context>
chip_gen: v5e
topology: v5e:2x2
jax: 0.10.0
libtpu: 0.0.40
codegen_flags: <defaults>
</compile_context>

<pallas_src>
import math

import jax
import jax.numpy as jnp
from jax.experimental import pallas as pl
from jax.experimental.pallas import tpu as pltpu

# ---------------- model hyper-parameters (small, consistent with module) ----
VOCAB = 16          # vocab_size (four-hot encoding dim)
D_MODEL = 32        # d_model
NHEAD = 4           # nhead
NUM_LAYERS = 2      # num_layers
DIM_FF = 64         # dim_feedforward
MAX_SEQ = 64        # max_seq_length
NUM_CLASSES = 2     # num_classes
LN_EPS = 1e-5
NEG_INF = -1e30     # fp32 additive key-padding mask (do NOT reuse for bf16)
LANES = 128


# ------------------------------ fused Pallas kernel --------------------------
def fused_forward_kernel(mask_ref, x_ref, pe_ref, w_proj_ref, vecp_ref,
                         w_in_ref, w_out_ref, w_ff1_ref, w_ff2_ref,
                         w_c1_ref, w_c2p_ref, b_head_ref, o_ref):
    BB, S, V = x_ref.shape
    D = w_proj_ref.shape[1]
    L = w_in_ref.shape[0]
    F = w_ff1_ref.shape[2]
    D2 = w_c1_ref.shape[1]
    H = NHEAD
    dh = D // H
    M = BB * S
    scale = 1.0 / math.sqrt(dh)
    f32 = jnp.float32

    maskf = mask_ref[...]                                   # (BB, S)
    # additive key-padding bias (0 = valid, NEG_INF = padded), built in-kernel
    key_bias = jnp.where(maskf > 0.0, 0.0, NEG_INF)         # (BB, S)

    # ---- input projection + positional encoding (pe broadcast over batch) ---
    h = jnp.dot(x_ref[...].reshape(M, V), w_proj_ref[...],
                preferred_element_type=f32)                  # (M, D)
    h = (h.reshape(BB, S, D) + pe_ref[...]).reshape(M, D)

    def layer_norm(y, g, b):
        # fused single-pass LN: var = E[y^2] - E[y]^2
        mu = jnp.mean(y, axis=-1, keepdims=True)
        ms = jnp.mean(y * y, axis=-1, keepdims=True)
        var = ms - mu * mu
        return (y - mu) * jax.lax.rsqrt(var + LN_EPS) * g + b

    for l in range(L):                                       # static (L = 2)
        vp = vecp_ref[l]                                     # (8, 128) bias/LN slab
        b_in, b_out = vp[0:1, :3 * D], vp[1:2, :D]
        ln1_g, ln1_b = vp[2:3, :D], vp[3:4, :D]
        b_ff1, b_ff2 = vp[4:5, :F], vp[5:6, :D]
        ln2_g, ln2_b = vp[6:7, :D], vp[7:8, :D]
        w_in, w_out = w_in_ref[l], w_out_ref[l]              # (D, 3D), (D, D)

        # ---- fused QKV: one lane-dense (M, D) x (D, 3D) matmul ----
        qkv = jnp.dot(h, w_in, preferred_element_type=f32) + b_in   # (M, 3D)

        # ---- attention, batched over B; static loop over the H=4 heads.
        # Output projection is folded per head and summed (no head concat).
        attn = None
        for hh in range(H):
            lo = hh * dh
            q = qkv[:, lo:lo + dh].reshape(BB, S, dh)
            k = qkv[:, D + lo:D + lo + dh].reshape(BB, S, dh)
            v = qkv[:, 2 * D + lo:2 * D + lo + dh].reshape(BB, S, dh)
            s = jnp.einsum('bqk,bsk->bqs', q, k,
                           preferred_element_type=f32) * scale      # (BB,S,S)
            s = s + key_bias[:, None, :]
            s_max = jnp.max(s, axis=-1, keepdims=True)
            e = jnp.exp(s - s_max)
            p = e * pl.reciprocal(jnp.sum(e, axis=-1, keepdims=True),
                                  approx=True)
            ctx = jnp.einsum('bqs,bsk->bqk', p, v,
                             preferred_element_type=f32)            # (BB,S,dh)
            part = jnp.dot(ctx.reshape(M, dh), w_out[lo:lo + dh, :],
                           preferred_element_type=f32)              # (M, D)
            attn = part if attn is None else attn + part

        h = layer_norm(h + attn + b_out, ln1_g, ln1_b)

        # ---- feed forward (batch collapsed: M = BB*S) ----
        ff = jnp.maximum(
            jnp.dot(h, w_ff1_ref[l], preferred_element_type=f32) + b_ff1, 0.0)
        ff = jnp.dot(ff, w_ff2_ref[l], preferred_element_type=f32) + b_ff2
        h = layer_norm(h + ff, ln2_g, ln2_b)

    # ---- masked mean pooling (no O(B^2) pooling matrix) ----
    # NOTE: an all-zero attention_mask row yields NaN (division by zero), which
    # matches the PyTorch reference behaviour.
    lens = jnp.sum(maskf, axis=-1, keepdims=True)            # (BB, 1)
    poolw = maskf / lens                                     # (BB, S)
    pooled = jnp.sum(h.reshape(BB, S, D) * poolw[:, :, None], axis=1)  # (BB, D)

    # ---- classifier head; output padded to 128 lanes for a dense store ----
    bh = b_head_ref[...]                                     # (2, 128)
    c = jnp.maximum(
        jnp.dot(pooled, w_c1_ref[...], preferred_element_type=f32)
        + bh[0:1, :D2], 0.0)
    o_ref[...] = jnp.dot(c, w_c2p_ref[...],
                         preferred_element_type=f32) + bh[1:2, :]


# ------------------------------ wrapper --------------------------------------
def _pick_batch_block(B):
    """Batch rows per grid step: full batch if B is small/ragged, else a
    multiple-of-8 divisor (satisfies the (8,128) block constraint)."""
    if B % 8 != 0:
        return B
    bb = 8
    while bb * 2 <= min(B, 64) and B % (bb * 2) == 0:
        bb *= 2
    return bb


def _pad_row(v, width):
    return jnp.zeros((1, LANES), jnp.float32).at[:, :width].set(
        v.reshape(1, width))


def traisformer_forward(params, input_ids, attention_mask):
    B, S, V = input_ids.shape
    D = params["w_proj"].shape[1]
    F = params["layers"][0]["w_ff1"].shape[1]
    D2 = params["w_c1"].shape[1]
    C = params["w_c2"].shape[1]
    L = len(params["layers"])
    assert 3 * D <= LANES and F <= LANES and C <= LANES

    x = input_ids.astype(jnp.float32)
    maskf = attention_mask.astype(jnp.float32)               # (B, S)

    # positional encoding + projection bias, passed once as an (S, D) block
    pe_bias = params["pe"][:S] + params["b_proj"]

    # all per-layer biases / LN params packed into one lane-dense slab
    vec_rows = []
    for lp in params["layers"]:
        vec_rows.append(jnp.concatenate([
            _pad_row(lp["b_in"], 3 * D),
            _pad_row(lp["b_out"], D),
            _pad_row(lp["ln1_g"], D),
            _pad_row(lp["ln1_b"], D),
            _pad_row(lp["b_ff1"], F),
            _pad_row(lp["b_ff2"], D),
            _pad_row(lp["ln2_g"], D),
            _pad_row(lp["ln2_b"], D),
        ], axis=0))                                           # (8, 128)
    vecp = jnp.stack(vec_rows, axis=0)                        # (L, 8, 128)

    w_in = jnp.stack([lp["w_in"] for lp in params["layers"]])    # (L, D, 3D)
    w_out = jnp.stack([lp["w_out"] for lp in params["layers"]])  # (L, D, D)
    w_ff1 = jnp.stack([lp["w_ff1"] for lp in params["layers"]])  # (L, D, F)
    w_ff2 = jnp.stack([lp["w_ff2"] for lp in params["layers"]])  # (L, F, D)

    # lane-dense classifier head: final projection padded to 128 output lanes
    w_c2p = jnp.zeros((D2, LANES), jnp.float32).at[:, :C].set(params["w_c2"])
    b_head = jnp.concatenate([_pad_row(params["b_c1"], D2),
                              _pad_row(params["b_c2"], C)], axis=0)  # (2, 128)

    BB = _pick_batch_block(B)
    grid = (B // BB,)

    def whole(shape):
        return pl.BlockSpec(shape, lambda i, _n=len(shape): (0,) * _n)

    out_pad = pl.pallas_call(
        fused_forward_kernel,
        out_shape=jax.ShapeDtypeStruct((B, LANES), jnp.float32),
        grid=grid,
        in_specs=[
            pl.BlockSpec((BB, S), lambda i: (i, 0)),          # mask
            pl.BlockSpec((BB, S, V), lambda i: (i, 0, 0)),    # x
            whole((S, D)),                                    # pe + b_proj
            whole((V, D)),                                    # w_proj
            whole((L, 8, LANES)),                             # packed biases/LN
            whole((L, D, 3 * D)),                             # w_in
            whole((L, D, D)),                                 # w_out
            whole((L, D, F)),                                 # w_ff1
            whole((L, F, D)),                                 # w_ff2
            whole((D, D2)),                                   # w_c1
            whole((D2, LANES)),                               # w_c2 (padded)
            whole((2, LANES)),                                # classifier biases
        ],
        out_specs=pl.BlockSpec((BB, LANES), lambda i: (i, 0)),
        compiler_params=pltpu.CompilerParams(
            dimension_semantics=("parallel",)),
    )(maskf, x, pe_bias, params["w_proj"], vecp,
      w_in, w_out, w_ff1, w_ff2,
      params["w_c1"], w_c2p, b_head)

    return out_pad[:, :C]


# ------------------------------ parameter init ------------------------------
def _xavier(key, fan_in, fan_out):
    limit = math.sqrt(6.0 / (fan_in + fan_out))
    return jax.random.uniform(key, (fan_in, fan_out), jnp.float32, -limit, limit)


def init_params(key):
    n_keys = 4 + NUM_LAYERS * 4
    ks = list(jax.random.split(key, n_keys))
    nxt = iter(ks)

    params = {}
    params["w_proj"] = _xavier(next(nxt), VOCAB, D_MODEL)
    params["b_proj"] = jnp.zeros((1, D_MODEL), jnp.float32)

    # positional encoding buffer (sin/cos interleave), same as PositionalEncoding
    position = jnp.arange(MAX_SEQ, dtype=jnp.float32)[:, None]
    div_term = jnp.exp(jnp.arange(0, D_MODEL, 2, dtype=jnp.float32)
                       * (-math.log(10000.0) / D_MODEL))
    pe = jnp.zeros((MAX_SEQ, D_MODEL), jnp.float32)
    pe = pe.at[:, 0::2].set(jnp.sin(position * div_term))
    pe = pe.at[:, 1::2].set(jnp.cos(position * div_term))
    params["pe"] = pe

    layers = []
    for _ in range(NUM_LAYERS):
        layers.append({
            "w_in": _xavier(next(nxt), D_MODEL, 3 * D_MODEL),
            "b_in": jnp.zeros((1, 3 * D_MODEL), jnp.float32),
            "w_out": _xavier(next(nxt), D_MODEL, D_MODEL),
            "b_out": jnp.zeros((1, D_MODEL), jnp.float32),
            "ln1_g": jnp.ones((1, D_MODEL), jnp.float32),
            "ln1_b": jnp.zeros((1, D_MODEL), jnp.float32),
            "w_ff1": _xavier(next(nxt), D_MODEL, DIM_FF),
            "b_ff1": jnp.zeros((1, DIM_FF), jnp.float32),
            "w_ff2": _xavier(next(nxt), DIM_FF, D_MODEL),
            "b_ff2": jnp.zeros((1, D_MODEL), jnp.float32),
            "ln2_g": jnp.ones((1, D_MODEL), jnp.float32),
            "ln2_b": jnp.zeros((1, D_MODEL), jnp.float32),
        })
    params["layers"] = layers

    params["w_c1"] = _xavier(next(nxt), D_MODEL, D_MODEL // 2)
    params["b_c1"] = jnp.zeros((1, D_MODEL // 2), jnp.float32)
    params["w_c2"] = _xavier(next(nxt), D_MODEL // 2, NUM_CLASSES)
    params["b_c2"] = jnp.zeros((1, NUM_CLASSES), jnp.float32)
    return params


# ------------------------------ pure-JAX reference --------------------------
def reference_forward(params, input_ids, attention_mask):
    B, S, _ = input_ids.shape
    D, H = D_MODEL, NHEAD
    dh = D // H
    x = input_ids @ params["w_proj"] + params["b_proj"] + params["pe"][:S]
    maskf = attention_mask.astype(jnp.float32)
    key_bias = jnp.where(maskf > 0, 0.0, NEG_INF)[:, None, None, :]   # (B,1,1,S)

    def ln(y, g, b):
        mu = y.mean(-1, keepdims=True)
        var = ((y - mu) ** 2).mean(-1, keepdims=True)
        return (y - mu) / jnp.sqrt(var + LN_EPS) * g + b

    for lp in params["layers"]:
        qkv = x @ lp["w_in"] + lp["b_in"]
        q, k, v = qkv[..., :D], qkv[..., D:2 * D], qkv[..., 2 * D:]
        q = q.reshape(B, S, H, dh).transpose(0, 2, 1, 3)
        k = k.reshape(B, S, H, dh).transpose(0, 2, 1, 3)
        v = v.reshape(B, S, H, dh).transpose(0, 2, 1, 3)
        s = (q @ k.transpose(0, 1, 3, 2)) / math.sqrt(dh) + key_bias
        p = jax.nn.softmax(s, axis=-1)
        ctx = (p @ v).transpose(0, 2, 1, 3).reshape(B, S, D)
        attn = ctx @ lp["w_out"] + lp["b_out"]
        x = ln(x + attn, lp["ln1_g"], lp["ln1_b"])
        ff = jnp.maximum(x @ lp["w_ff1"] + lp["b_ff1"], 0.0) @ lp["w_ff2"] + lp["b_ff2"]
        x = ln(x + ff, lp["ln2_g"], lp["ln2_b"])

    m = maskf[:, :, None]
    pooled = (x * m).sum(1) / maskf.sum(1, keepdims=True)
    h = jnp.maximum(pooled @ params["w_c1"] + params["b_c1"], 0.0)
    return h @ params["w_c2"] + params["b_c2"]


# ------------------------------ main -----------------------------------------
if __name__ == "__main__":
    key = jax.random.PRNGKey(0)
    kp, kx = jax.random.split(key)

    B, S = 2, 8
    params = init_params(kp)
    input_ids = jax.random.normal(kx, (B, S, VOCAB), jnp.float32)
    # attention_mask: (B, S), 1 = valid token, 0 = padding
    attention_mask = jnp.ones((B, S), jnp.float32).at[1, S - 2:].set(0.0)

    fwd = jax.jit(traisformer_forward)
    logits = fwd(params, input_ids, attention_mask)
    logits = jax.block_until_ready(logits)

    ref = reference_forward(params, input_ids, attention_mask)
    assert logits.shape == (B, NUM_CLASSES)
    # tolerance slightly relaxed vs exact math: approx EUP reciprocal in the
    # softmax + single-pass LayerNorm variance.
    assert jnp.allclose(logits, ref, atol=3e-3, rtol=3e-3), (logits, ref)

    print("KERNEL_OK")
</pallas_src>

<mosaic_0001>
module attributes {stable_mosaic.version = 11 : i64} {
  func.func @fused_forward_kernel(%arg0: i32, %arg1: memref<2x8xf32, #tpu.memory_space<vmem>>, %arg2: memref<2x8x16xf32, #tpu.memory_space<vmem>>, %arg3: memref<8x32xf32, #tpu.memory_space<vmem>>, %arg4: memref<16x32xf32, #tpu.memory_space<vmem>>, %arg5: memref<2x8x128xf32, #tpu.memory_space<vmem>>, %arg6: memref<2x32x96xf32, #tpu.memory_space<vmem>>, %arg7: memref<2x32x32xf32, #tpu.memory_space<vmem>>, %arg8: memref<2x32x64xf32, #tpu.memory_space<vmem>>, %arg9: memref<2x64x32xf32, #tpu.memory_space<vmem>>, %arg10: memref<32x16xf32, #tpu.memory_space<vmem>>, %arg11: memref<16x128xf32, #tpu.memory_space<vmem>>, %arg12: memref<2x128xf32, #tpu.memory_space<vmem>>, %arg13: memref<2x128xf32, #tpu.memory_space<vmem>>) attributes {dimension_semantics = [#tpu.dimension_semantics<parallel>], iteration_bounds = array<i64: 1>, scalar_prefetch = 0 : i64, scratch_operands = 0 : i64, tpu.core_type = #tpu.core_type<tc>, window_params = [{transform_indices = @transform_0, window_bounds = array<i64: 2, 8>}, {transform_indices = @transform_1, window_bounds = array<i64: 2, 8, 16>}, {pipeline_mode = #tpu.pipeline_mode<synchronous>, transform_indices = @transform_2, window_bounds = array<i64: 8, 32>}, {pipeline_mode = #tpu.pipeline_mode<synchronous>, transform_indices = @transform_3, window_bounds = array<i64: 16, 32>}, {pipeline_mode = #tpu.pipeline_mode<synchronous>, transform_indices = @transform_4, window_bounds = array<i64: 2, 8, 128>}, {pipeline_mode = #tpu.pipeline_mode<synchronous>, transform_indices = @transform_5, window_bounds = array<i64: 2, 32, 96>}, {pipeline_mode = #tpu.pipeline_mode<synchronous>, transform_indices = @transform_6, window_bounds = array<i64: 2, 32, 32>}, {pipeline_mode = #tpu.pipeline_mode<synchronous>, transform_indices = @transform_7, window_bounds = array<i64: 2, 32, 64>}, {pipeline_mode = #tpu.pipeline_mode<synchronous>, transform_indices = @transform_8, window_bounds = array<i64: 2, 64, 32>}, {pipeline_mode = #tpu.pipeline_mode<synchronous>, transform_indices = @transform_9, window_bounds = array<i64: 32, 16>}, {pipeline_mode = #tpu.pipeline_mode<synchronous>, transform_indices = @transform_10, window_bounds = array<i64: 16, 128>}, {pipeline_mode = #tpu.pipeline_mode<synchronous>, transform_indices = @transform_11, window_bounds = array<i64: 2, 128>}, {transform_indices = @transform_12, window_bounds = array<i64: 2, 128>}]} {
    %c0 = arith.constant 0 : index
    %c0_0 = arith.constant 0 : index
    %0 = vector.load %arg1[%c0, %c0_0] : memref<2x8xf32, #tpu.memory_space<vmem>>, vector<2x8xf32>
    %cst = arith.constant 0.000000e+00 : f32
    %1 = vector.broadcast %cst : f32 to vector<2x8xf32>
    %2 = arith.cmpf ogt, %0, %1 : vector<2x8xf32>
    %cst_1 = arith.constant 0.000000e+00 : f32
    %cst_2 = arith.constant -1.000000e+30 : f32
    %3 = vector.broadcast %cst_1 : f32 to vector<2x8xf32>
    %4 = vector.broadcast %cst_2 : f32 to vector<2x8xf32>
    %5 = arith.select %2, %3, %4 : vector<2x8xi1>, vector<2x8xf32>
    %c0_3 = arith.constant 0 : index
    %c0_4 = arith.constant 0 : index
    %c0_5 = arith.constant 0 : index
    %6 = vector.load %arg2[%c0_3, %c0_4, %c0_5] : memref<2x8x16xf32, #tpu.memory_space<vmem>>, vector<2x8x16xf32>
    %7 = vector.shape_cast %6 : vector<2x8x16xf32> to vector<16x16xf32>
    %c0_6 = arith.constant 0 : index
    %c0_7 = arith.constant 0 : index
    %8 = vector.load %arg4[%c0_6, %c0_7] : memref<16x32xf32, #tpu.memory_space<vmem>>, vector<16x32xf32>
    %cst_8 = arith.constant dense<0.000000e+00> : vector<16x32xf32>
    %9 = tpu.matmul %7, %8, %cst_8 {dimension_numbers = #tpu.dot_dimension_numbers<[1], [0], [0], [1], [0, 0, 1, 1], [], []>} : vector<16x16xf32>, vector<16x32xf32>, vector<16x32xf32> -> vector<16x32xf32>
    %10 = vector.shape_cast %9 : vector<16x32xf32> to vector<2x8x32xf32>
    %c0_9 = arith.constant 0 : index
    %c0_10 = arith.constant 0 : index
    %11 = vector.load %arg3[%c0_9, %c0_10] : memref<8x32xf32, #tpu.memory_space<vmem>>, vector<8x32xf32>
    %12 = vector.shape_cast %11 : vector<8x32xf32> to vector<1x8x32xf32>
    %13 = vector.broadcast %12 : vector<1x8x32xf32> to vector<2x8x32xf32>
    %14 = arith.addf %10, %13 : vector<2x8x32xf32>
    %15 = vector.shape_cast %14 : vector<2x8x32xf32> to vector<16x32xf32>
    %c0_11 = arith.constant 0 : index
    %c0_12 = arith.constant 0 : index
    %c0_13 = arith.constant 0 : index
    %16 = vector.load %arg5[%c0_11, %c0_12, %c0_13] : memref<2x8x128xf32, #tpu.memory_space<vmem>>, vector<1x8x128xf32>
    %17 = vector.shape_cast %16 : vector<1x8x128xf32> to vector<8x128xf32>
    %18 = vector.extract_strided_slice %17 {offsets = [0, 0], sizes = [1, 96], strides = [1, 1]} : vector<8x128xf32> to vector<1x96xf32>
    %19 = vector.extract_strided_slice %17 {offsets = [1, 0], sizes = [1, 32], strides = [1, 1]} : vector<8x128xf32> to vector<1x32xf32>
    %20 = vector.extract_strided_slice %17 {offsets = [2, 0], sizes = [1, 32], strides = [1, 1]} : vector<8x128xf32> to vector<1x32xf32>
    %21 = vector.extract_strided_slice %17 {offsets = [3, 0], sizes = [1, 32], strides = [1, 1]} : vector<8x128xf32> to vector<1x32xf32>
    %22 = vector.extract_strided_slice %17 {offsets = [4, 0], sizes = [1, 64], strides = [1, 1]} : vector<8x128xf32> to vector<1x64xf32>
    %23 = vector.extract_strided_slice %17 {offsets = [5, 0], sizes = [1, 32], strides = [1, 1]} : vector<8x128xf32> to vector<1x32xf32>
    %24 = vector.extract_strided_slice %17 {offsets = [6, 0], sizes = [1, 32], strides = [1, 1]} : vector<8x128xf32> to vector<1x32xf32>
    %25 = vector.extract_strided_slice %17 {offsets = [7, 0], sizes = [1, 32], strides = [1, 1]} : vector<8x128xf32> to vector<1x32xf32>
    %c0_14 = arith.constant 0 : index
    %c0_15 = arith.constant 0 : index
    %c0_16 = arith.constant 0 : index
    %26 = vector.load %arg6[%c0_14, %c0_15, %c0_16] : memref<2x32x96xf32, #tpu.memory_space<vmem>>, vector<1x32x96xf32>
    %27 = vector.shape_cast %26 : vector<1x32x96xf32> to vector<32x96xf32>
    %c0_17 = arith.constant 0 : index
    %c0_18 = arith.constant 0 : index
    %c0_19 = arith.constant 0 : index
    %28 = vector.load %arg7[%c0_17, %c0_18, %c0_19] : memref<2x32x32xf32, #tpu.memory_space<vmem>>, vector<1x32x32xf32>
    %29 = vector.shape_cast %28 : vector<1x32x32xf32> to vector<32x32xf32>
    %cst_20 = arith.constant dense<0.000000e+00> : vector<16x96xf32>
    %30 = tpu.matmul %15, %27, %cst_20 {dimension_numbers = #tpu.dot_dimension_numbers<[1], [0], [0], [1], [0, 0, 1, 1], [], []>} : vector<16x32xf32>, vector<32x96xf32>, vector<16x96xf32> -> vector<16x96xf32>
    %31 = vector.broadcast %18 : vector<1x96xf32> to vector<16x96xf32>
    %32 = arith.addf %30, %31 : vector<16x96xf32>
    %33 = vector.extract_strided_slice %32 {offsets = [0, 0], sizes = [16, 8], strides = [1, 1]} : vector<16x96xf32> to vector<16x8xf32>
    %34 = vector.shape_cast %33 : vector<16x8xf32> to vector<2x8x8xf32>
    %35 = vector.extract_strided_slice %32 {offsets = [0, 32], sizes = [16, 8], strides = [1, 1]} : vector<16x96xf32> to vector<16x8xf32>
    %36 = vector.shape_cast %35 : vector<16x8xf32> to vector<2x8x8xf32>
    %37 = vector.extract_strided_slice %32 {offsets = [0, 64], sizes = [16, 8], strides = [1, 1]} : vector<16x96xf32> to vector<16x8xf32>
    %38 = vector.shape_cast %37 : vector<16x8xf32> to vector<2x8x8xf32>
    "tpu.trace_start"() <{level = 10 : i32, message = "bqk,bsk->bqs"}> : () -> ()
    %cst_21 = arith.constant dense<0.000000e+00> : vector<2x8x8xf32>
    %39 = tpu.matmul %34, %36, %cst_21 {dimension_numbers = #tpu.dot_dimension_numbers<[2], [2], [1], [1], [0, 0, 0, 1, 1, 1], [0], [0]>} : vector<2x8x8xf32>, vector<2x8x8xf32>, vector<2x8x8xf32> -> vector<2x8x8xf32>
    "tpu.trace_stop"() : () -> ()
    %cst_22 = arith.constant 0.353553385 : f32
    %40 = vector.broadcast %cst_22 : f32 to vector<2x8x8xf32>
    %41 = arith.mulf %39, %40 : vector<2x8x8xf32>
    %42 = vector.shape_cast %5 : vector<2x8xf32> to vector<2x1x8xf32>
    %43 = vector.broadcast %42 : vector<2x1x8xf32> to vector<2x8x8xf32>
    %44 = arith.addf %41, %43 : vector<2x8x8xf32>
    %cst_23 = arith.constant dense<0xFF800000> : vector<2x8xf32>
    %45 = vector.multi_reduction <maximumf>, %44, %cst_23 [2] : vector<2x8x8xf32> to vector<2x8xf32>
    %46 = vector.shape_cast %45 : vector<2x8xf32> to vector<2x8x1xf32>
    %47 = vector.broadcast %46 : vector<2x8x1xf32> to vector<2x8x8xf32>
    %48 = arith.subf %44, %47 : vector<2x8x8xf32>
    %49 = math.exp %48 : vector<2x8x8xf32>
    %cst_24 = arith.constant dense<0.000000e+00> : vector<2x8xf32>
    %50 = vector.multi_reduction <add>, %49, %cst_24 [2] : vector<2x8x8xf32> to vector<2x8xf32>
    %51 = vector.shape_cast %50 : vector<2x8xf32> to vector<2x8x1xf32>
    %52 = tpu.reciprocal %51 {approx = true} : vector<2x8x1xf32> -> vector<2x8x1xf32>
    %53 = vector.broadcast %52 : vector<2x8x1xf32> to vector<2x8x8xf32>
    %54 = arith.mulf %49, %53 : vector<2x8x8xf32>
    "tpu.trace_start"() <{level = 10 : i32, message = "bqs,bsk->bqk"}> : () -> ()
    %cst_25 = arith.constant dense<0.000000e+00> : vector<2x8x8xf32>
    %55 = tpu.matmul %54, %38, %cst_25 {dimension_numbers = #tpu.dot_dimension_numbers<[2], [1], [1], [2], [0, 0, 0, 1, 1, 2], [0], [0]>} : vector<2x8x8xf32>, vector<2x8x8xf32>, vector<2x8x8xf32> -> vector<2x8x8xf32>
    "tpu.trace_stop"() : () -> ()
    %56 = vector.shape_cast %55 : vector<2x8x8xf32> to vector<16x8xf32>
    %57 = vector.extract_strided_slice %29 {offsets = [0, 0], sizes = [8, 32], strides = [1, 1]} : vector<32x32xf32> to vector<8x32xf32>
    %cst_26 = arith.constant dense<0.000000e+00> : vector<16x32xf32>
    %58 = tpu.matmul %56, %57, %cst_26 {dimension_numbers = #tpu.dot_dimension_numbers<[1], [0], [0], [1], [0, 0, 1, 1], [], []>} : vector<16x8xf32>, vector<8x32xf32>, vector<16x32xf32> -> vector<16x32xf32>
    %59 = vector.extract_strided_slice %32 {offsets = [0, 8], sizes = [16, 8], strides = [1, 1]} : vector<16x96xf32> to vector<16x8xf32>
    %60 = vector.shape_cast %59 : vector<16x8xf32> to vector<2x8x8xf32>
    %61 = vector.extract_strided_slice %32 {offsets = [0, 40], sizes = [16, 8], strides = [1, 1]} : vector<16x96xf32> to vector<16x8xf32>
    %62 = vector.shape_cast %61 : vector<16x8xf32> to vector<2x8x8xf32>
    %63 = vector.extract_strided_slice %32 {offsets = [0, 72], sizes = [16, 8], strides = [1, 1]} : vector<16x96xf32> to vector<16x8xf32>
    %64 = vector.shape_cast %63 : vector<16x8xf32> to vector<2x8x8xf32>
    "tpu.trace_start"() <{level = 10 : i32, message = "bqk,bsk->bqs"}> : () -> ()
    %cst_27 = arith.constant dense<0.000000e+00> : vector<2x8x8xf32>
    %65 = tpu.matmul %60, %62, %cst_27 {dimension_numbers = #tpu.dot_dimension_numbers<[2], [2], [1], [1], [0, 0, 0, 1, 1, 1], [0], [0]>} : vector<2x8x8xf32>, vector<2x8x8xf32>, vector<2x8x8xf32> -> vector<2x8x8xf32>
    "tpu.trace_stop"() : () -> ()
    %cst_28 = arith.constant 0.353553385 : f32
    %66 = vector.broadcast %cst_28 : f32 to vector<2x8x8xf32>
    %67 = arith.mulf %65, %66 : vector<2x8x8xf32>
    %68 = vector.shape_cast %5 : vector<2x8xf32> to vector<2x1x8xf32>
    %69 = vector.broadcast %68 : vector<2x1x8xf32> to vector<2x8x8xf32>
    %70 = arith.addf %67, %69 : vector<2x8x8xf32>
    %cst_29 = arith.constant dense<0xFF800000> : vector<2x8xf32>
    %71 = vector.multi_reduction <maximumf>, %70, %cst_29 [2] : vector<2x8x8xf32> to vector<2x8xf32>
    %72 = vector.shape_cast %71 : vector<2x8xf32> to vector<2x8x1xf32>
    %73 = vector.broadcast %72 : vector<2x8x1xf32> to vector<2x8x8xf32>
    %74 = arith.subf %70, %73 : vector<2x8x8xf32>
    %75 = math.exp %74 : vector<2x8x8xf32>
    %cst_30 = arith.constant dense<0.000000e+00> : vector<2x8xf32>
    %76 = vector.multi_reduction <add>, %75, %cst_30 [2] : vector<2x8x8xf32> to vector<2x8xf32>
    %77 = vector.shape_cast %76 : vector<2x8xf32> to vector<2x8x1xf32>
    %78 = tpu.reciprocal %77 {approx = true} : vector<2x8x1xf32> -> vector<2x8x1xf32>
    %79 = vector.broadcast %78 : vector<2x8x1xf32> to vector<2x8x8xf32>
    %80 = arith.mulf %75, %79 : vector<2x8x8xf32>
    "tpu.trace_start"() <{level = 10 : i32, message = "bqs,bsk->bqk"}> : () -> ()
    %cst_31 = arith.constant dense<0.000000e+00> : vector<2x8x8xf32>
    %81 = tpu.matmul %80, %64, %cst_31 {dimension_numbers = #tpu.dot_dimension_numbers<[2], [1], [1], [2], [0, 0, 0, 1, 1, 2], [0], [0]>} : vector<2x8x8xf32>, vector<2x8x8xf32>, vector<2x8x8xf32> -> vector<2x8x8xf32>
    "tpu.trace_stop"() : () -> ()
    %82 = vector.shape_cast %81 : vector<2x8x8xf32> to vector<16x8xf32>
    %83 = vector.extract_strided_slice %29 {offsets = [8, 0], sizes = [8, 32], strides = [1, 1]} : vector<32x32xf32> to vector<8x32xf32>
    %cst_32 = arith.constant dense<0.000000e+00> : vector<16x32xf32>
    %84 = tpu.matmul %82, %83, %cst_32 {dimension_numbers = #tpu.dot_dimension_numbers<[1], [0], [0], [1], [0, 0, 1, 1], [], []>} : vector<16x8xf32>, vector<8x32xf32>, vector<16x32xf32> -> vector<16x32xf32>
    %85 = arith.addf %58, %84 : vector<16x32xf32>
    %86 = vector.extract_strided_slice %32 {offsets = [0, 16], sizes = [16, 8], strides = [1, 1]} : vector<16x96xf32> to vector<16x8xf32>
    %87 = vector.shape_cast %86 : vector<16x8xf32> to vector<2x8x8xf32>
    %88 = vector.extract_strided_slice %32 {offsets = [0, 48], sizes = [16, 8], strides = [1, 1]} : vector<16x96xf32> to vector<16x8xf32>
    %89 = vector.shape_cast %88 : vector<16x8xf32> to vector<2x8x8xf32>
    %90 = vector.extract_strided_slice %32 {offsets = [0, 80], sizes = [16, 8], strides = [1, 1]} : vector<16x96xf32> to vector<16x8xf32>
    %91 = vector.shape_cast %90 : vector<16x8xf32> to vector<2x8x8xf32>
    "tpu.trace_start"() <{level = 10 : i32, message = "bqk,bsk->bqs"}> : () -> ()
    %cst_33 = arith.constant dense<0.000000e+00> : vector<2x8x8xf32>
    %92 = tpu.matmul %87, %89, %cst_33 {dimension_numbers = #tpu.dot_dimension_numbers<[2], [2], [1], [1], [0, 0, 0, 1, 1, 1], [0], [0]>} : vector<2x8x8xf32>, vector<2x8x8xf32>, vector<2x8x8xf32> -> vector<2x8x8xf32>
    "tpu.trace_stop"() : () -> ()
    %cst_34 = arith.constant 0.353553385 : f32
    %93 = vector.broadcast %cst_34 : f32 to vector<2x8x8xf32>
    %94 = arith.mulf %92, %93 : vector<2x8x8xf32>
    %95 = vector.shape_cast %5 : vector<2x8xf32> to vector<2x1x8xf32>
    %96 = vector.broadcast %95 : vector<2x1x8xf32> to vector<2x8x8xf32>
    %97 = arith.addf %94, %96 : vector<2x8x8xf32>
    %cst_35 = arith.constant dense<0xFF800000> : vector<2x8xf32>
    %98 = vector.multi_reduction <maximumf>, %97, %cst_35 [2] : vector<2x8x8xf32> to vector<2x8xf32>
    %99 = vector.shape_cast %98 : vector<2x8xf32> to vector<2x8x1xf32>
    %100 = vector.broadcast %99 : vector<2x8x1xf32> to vector<2x8x8xf32>
    %101 = arith.subf %97, %100 : vector<2x8x8xf32>
    %102 = math.exp %101 : vector<2x8x8xf32>
    %cst_36 = arith.constant dense<0.000000e+00> : vector<2x8xf32>
    %103 = vector.multi_reduction <add>, %102, %cst_36 [2] : vector<2x8x8xf32> to vector<2x8xf32>
    %104 = vector.shape_cast %103 : vector<2x8xf32> to vector<2x8x1xf32>
    %105 = tpu.reciprocal %104 {approx = true} : vector<2x8x1xf32> -> vector<2x8x1xf32>
    %106 = vector.broadcast %105 : vector<2x8x1xf32> to vector<2x8x8xf32>
    %107 = arith.mulf %102, %106 : vector<2x8x8xf32>
    "tpu.trace_start"() <{level = 10 : i32, message = "bqs,bsk->bqk"}> : () -> ()
    %cst_37 = arith.constant dense<0.000000e+00> : vector<2x8x8xf32>
    %108 = tpu.matmul %107, %91, %cst_37 {dimension_numbers = #tpu.dot_dimension_numbers<[2], [1], [1], [2], [0, 0, 0, 1, 1, 2], [0], [0]>} : vector<2x8x8xf32>, vector<2x8x8xf32>, vector<2x8x8xf32> -> vector<2x8x8xf32>
    "tpu.trace_stop"() : () -> ()
    %109 = vector.shape_cast %108 : vector<2x8x8xf32> to vector<16x8xf32>
    %110 = vector.extract_strided_slice %29 {offsets = [16, 0], sizes = [8, 32], strides = [1, 1]} : vector<32x32xf32> to vector<8x32xf32>
    %cst_38 = arith.constant dense<0.000000e+00> : vector<16x32xf32>
    %111 = tpu.matmul %109, %110, %cst_38 {dimension_numbers = #tpu.dot_dimension_numbers<[1], [0], [0], [1], [0, 0, 1, 1], [], []>} : vector<16x8xf32>, vector<8x32xf32>, vector<16x32xf32> -> vector<16x32xf32>
    %112 = arith.addf %85, %111 : vector<16x32xf32>
    %113 = vector.extract_strided_slice %32 {offsets = [0, 24], sizes = [16, 8], strides = [1, 1]} : vector<16x96xf32> to vector<16x8xf32>
    %114 = vector.shape_cast %113 : vector<16x8xf32> to vector<2x8x8xf32>
    %115 = vector.extract_strided_slice %32 {offsets = [0, 56], sizes = [16, 8], strides = [1, 1]} : vector<16x96xf32> to vector<16x8xf32>
    %116 = vector.shape_cast %115 : vector<16x8xf32> to vector<2x8x8xf32>
    %117 = vector.extract_strided_slice %32 {offsets = [0, 88], sizes = [16, 8], strides = [1, 1]} : vector<16x96xf32> to vector<16x8xf32>
    %118 = vector.shape_cast %117 : vector<16x8xf32> to vector<2x8x8xf32>
    "tpu.trace_start"() <{level = 10 : i32, message = "bqk,bsk->bqs"}> : () -> ()
    %cst_39 = arith.constant dense<0.000000e+00> : vector<2x8x8xf32>
    %119 = tpu.matmul %114, %116, %cst_39 {dimension_numbers = #tpu.dot_dimension_numbers<[2], [2], [1], [1], [0, 0, 0, 1, 1, 1], [0], [0]>} : vector<2x8x8xf32>, vector<2x8x8xf32>, vector<2x8x8xf32> -> vector<2x8x8xf32>
    "tpu.trace_stop"() : () -> ()
    %cst_40 = arith.constant 0.353553385 : f32
    %120 = vector.broadcast %cst_40 : f32 to vector<2x8x8xf32>
    %121 = arith.mulf %119, %120 : vector<2x8x8xf32>
    %122 = vector.shape_cast %5 : vector<2x8xf32> to vector<2x1x8xf32>
    %123 = vector.broadcast %122 : vector<2x1x8xf32> to vector<2x8x8xf32>
    %124 = arith.addf %121, %123 : vector<2x8x8xf32>
    %cst_41 = arith.constant dense<0xFF800000> : vector<2x8xf32>
    %125 = vector.multi_reduction <maximumf>, %124, %cst_41 [2] : vector<2x8x8xf32> to vector<2x8xf32>
    %126 = vector.shape_cast %125 : vector<2x8xf32> to vector<2x8x1xf32>
    %127 = vector.broadcast %126 : vector<2x8x1xf32> to vector<2x8x8xf32>
    %128 = arith.subf %124, %127 : vector<2x8x8xf32>
    %129 = math.exp %128 : vector<2x8x8xf32>
    %cst_42 = arith.constant dense<0.000000e+00> : vector<2x8xf32>
    %130 = vector.multi_reduction <add>, %129, %cst_42 [2] : vector<2x8x8xf32> to vector<2x8xf32>
    %131 = vector.shape_cast %130 : vector<2x8xf32> to vector<2x8x1xf32>
    %132 = tpu.reciprocal %131 {approx = true} : vector<2x8x1xf32> -> vector<2x8x1xf32>
    %133 = vector.broadcast %132 : vector<2x8x1xf32> to vector<2x8x8xf32>
    %134 = arith.mulf %129, %133 : vector<2x8x8xf32>
    "tpu.trace_start"() <{level = 10 : i32, message = "bqs,bsk->bqk"}> : () -> ()
    %cst_43 = arith.constant dense<0.000000e+00> : vector<2x8x8xf32>
    %135 = tpu.matmul %134, %118, %cst_43 {dimension_numbers = #tpu.dot_dimension_numbers<[2], [1], [1], [2], [0, 0, 0, 1, 1, 2], [0], [0]>} : vector<2x8x8xf32>, vector<2x8x8xf32>, vector<2x8x8xf32> -> vector<2x8x8xf32>
    "tpu.trace_stop"() : () -> ()
    %136 = vector.shape_cast %135 : vector<2x8x8xf32> to vector<16x8xf32>
    %137 = vector.extract_strided_slice %29 {offsets = [24, 0], sizes = [8, 32], strides = [1, 1]} : vector<32x32xf32> to vector<8x32xf32>
    %cst_44 = arith.constant dense<0.000000e+00> : vector<16x32xf32>
    %138 = tpu.matmul %136, %137, %cst_44 {dimension_numbers = #tpu.dot_dimension_numbers<[1], [0], [0], [1], [0, 0, 1, 1], [], []>} : vector<16x8xf32>, vector<8x32xf32>, vector<16x32xf32> -> vector<16x32xf32>
    %139 = arith.addf %112, %138 : vector<16x32xf32>
    %140 = arith.addf %15, %139 : vector<16x32xf32>
    %141 = vector.broadcast %19 : vector<1x32xf32> to vector<16x32xf32>
    %142 = arith.addf %140, %141 : vector<16x32xf32>
    %cst_45 = arith.constant dense<0.000000e+00> : vector<16xf32>
    %143 = vector.multi_reduction <add>, %142, %cst_45 [1] : vector<16x32xf32> to vector<16xf32>
    %144 = vector.shape_cast %143 : vector<16xf32> to vector<16x1xf32>
    %cst_46 = arith.constant 3.200000e+01 : f32
    %145 = vector.broadcast %cst_46 : f32 to vector<16x1xf32>
    %146 = arith.divf %144, %145 : vector<16x1xf32>
    %147 = arith.mulf %142, %142 : vector<16x32xf32>
    %cst_47 = arith.constant dense<0.000000e+00> : vector<16xf32>
    %148 = vector.multi_reduction <add>, %147, %cst_47 [1] : vector<16x32xf32> to vector<16xf32>
    %149 = vector.shape_cast %148 : vector<16xf32> to vector<16x1xf32>
    %cst_48 = arith.constant 3.200000e+01 : f32
    %150 = vector.broadcast %cst_48 : f32 to vector<16x1xf32>
    %151 = arith.divf %149, %150 : vector<16x1xf32>
    %152 = arith.mulf %146, %146 : vector<16x1xf32>
    %153 = arith.subf %151, %152 : vector<16x1xf32>
    %154 = vector.broadcast %146 : vector<16x1xf32> to vector<16x32xf32>
    %155 = arith.subf %142, %154 : vector<16x32xf32>
    %cst_49 = arith.constant 9.99999974E-6 : f32
    %156 = vector.broadcast %cst_49 : f32 to vector<16x1xf32>
    %157 = arith.addf %153, %156 : vector<16x1xf32>
    %158 = math.rsqrt %157 : vector<16x1xf32>
    %159 = vector.broadcast %158 : vector<16x1xf32> to vector<16x32xf32>
    %160 = arith.mulf %155, %159 : vector<16x32xf32>
    %161 = vector.broadcast %20 : vector<1x32xf32> to vector<16x32xf32>
    %162 = arith.mulf %160, %161 : vector<16x32xf32>
    %163 = vector.broadcast %21 : vector<1x32xf32> to vector<16x32xf32>
    %164 = arith.addf %162, %163 : vector<16x32xf32>
    %c0_50 = arith.constant 0 : index
    %c0_51 = arith.constant 0 : index
    %c0_52 = arith.constant 0 : index
    %165 = vector.load %arg8[%c0_50, %c0_51, %c0_52] : memref<2x32x64xf32, #tpu.memory_space<vmem>>, vector<1x32x64xf32>
    %166 = vector.shape_cast %165 : vector<1x32x64xf32> to vector<32x64xf32>
    %cst_53 = arith.constant dense<0.000000e+00> : vector<16x64xf32>
    %167 = tpu.matmul %164, %166, %cst_53 {dimension_numbers = #tpu.dot_dimension_numbers<[1], [0], [0], [1], [0, 0, 1, 1], [], []>} : vector<16x32xf32>, vector<32x64xf32>, vector<16x64xf32> -> vector<16x64xf32>
    %168 = vector.broadcast %22 : vector<1x64xf32> to vector<16x64xf32>
    %169 = arith.addf %167, %168 : vector<16x64xf32>
    %cst_54 = arith.constant 0.000000e+00 : f32
    %170 = vector.broadcast %cst_54 : f32 to vector<16x64xf32>
    %171 = arith.maximumf %169, %170 : vector<16x64xf32>
    %c0_55 = arith.constant 0 : index
    %c0_56 = arith.constant 0 : index
    %c0_57 = arith.constant 0 : index
    %172 = vector.load %arg9[%c0_55, %c0_56, %c0_57] : memref<2x64x32xf32, #tpu.memory_space<vmem>>, vector<1x64x32xf32>
    %173 = vector.shape_cast %172 : vector<1x64x32xf32> to vector<64x32xf32>
    %cst_58 = arith.constant dense<0.000000e+00> : vector<16x32xf32>
    %174 = tpu.matmul %171, %173, %cst_58 {dimension_numbers = #tpu.dot_dimension_numbers<[1], [0], [0], [1], [0, 0, 1, 1], [], []>} : vector<16x64xf32>, vector<64x32xf32>, vector<16x32xf32> -> vector<16x32xf32>
    %175 = vector.broadcast %23 : vector<1x32xf32> to vector<16x32xf32>
    %176 = arith.addf %174, %175 : vector<16x32xf32>
    %177 = arith.addf %164, %176 : vector<16x32xf32>
    %cst_59 = arith.constant dense<0.000000e+00> : vector<16xf32>
    %178 = vector.multi_reduction <add>, %177, %cst_59 [1] : vector<16x32xf32> to vector<16xf32>
    %179 = vector.shape_cast %178 : vector<16xf32> to vector<16x1xf32>
    %cst_60 = arith.constant 3.200000e+01 : f32
    %180 = vector.broadcast %cst_60 : f32 to vector<16x1xf32>
    %181 = arith.divf %179, %180 : vector<16x1xf32>
    %182 = arith.mulf %177, %177 : vector<16x32xf32>
    %cst_61 = arith.constant dense<0.000000e+00> : vector<16xf32>
    %183 = vector.multi_reduction <add>, %182, %cst_61 [1] : vector<16x32xf32> to vector<16xf32>
    %184 = vector.shape_cast %183 : vector<16xf32> to vector<16x1xf32>
    %cst_62 = arith.constant 3.200000e+01 : f32
    %185 = vector.broadcast %cst_62 : f32 to vector<16x1xf32>
    %186 = arith.divf %184, %185 : vector<16x1xf32>
    %187 = arith.mulf %181, %181 : vector<16x1xf32>
    %188 = arith.subf %186, %187 : vector<16x1xf32>
    %189 = vector.broadcast %181 : vector<16x1xf32> to vector<16x32xf32>
    %190 = arith.subf %177, %189 : vector<16x32xf32>
    %cst_63 = arith.constant 9.99999974E-6 : f32
    %191 = vector.broadcast %cst_63 : f32 to vector<16x1xf32>
    %192 = arith.addf %188, %191 : vector<16x1xf32>
    %193 = math.rsqrt %192 : vector<16x1xf32>
    %194 = vector.broadcast %193 : vector<16x1xf32> to vector<16x32xf32>
    %195 = arith.mulf %190, %194 : vector<16x32xf32>
    %196 = vector.broadcast %24 : vector<1x32xf32> to vector<16x32xf32>
    %197 = arith.mulf %195, %196 : vector<16x32xf32>
    %198 = vector.broadcast %25 : vector<1x32xf32> to vector<16x32xf32>
    %199 = arith.addf %197, %198 : vector<16x32xf32>
    %c1 = arith.constant 1 : index
    %c0_64 = arith.constant 0 : index
    %c0_65 = arith.constant 0 : index
    %200 = vector.load %arg5[%c1, %c0_64, %c0_65] : memref<2x8x128xf32, #tpu.memory_space<vmem>>, vector<1x8x128xf32>
    %201 = vector.shape_cast %200 : vector<1x8x128xf32> to vector<8x128xf32>
    %202 = vector.extract_strided_slice %201 {offsets = [0, 0], sizes = [1, 96], strides = [1, 1]} : vector<8x128xf32> to vector<1x96xf32>
    %203 = vector.extract_strided_slice %201 {offsets = [1, 0], sizes = [1, 32], strides = [1, 1]} : vector<8x128xf32> to vector<1x32xf32>
    %204 = vector.extract_strided_slice %201 {offsets = [2, 0], sizes = [1, 32], strides = [1, 1]} : vector<8x128xf32> to vector<1x32xf32>
    %205 = vector.extract_strided_slice %201 {offsets = [3, 0], sizes = [1, 32], strides = [1, 1]} : vector<8x128xf32> to vector<1x32xf32>
    %206 = vector.extract_strided_slice %201 {offsets = [4, 0], sizes = [1, 64], strides = [1, 1]} : vector<8x128xf32> to vector<1x64xf32>
    %207 = vector.extract_strided_slice %201 {offsets = [5, 0], sizes = [1, 32], strides = [1, 1]} : vector<8x128xf32> to vector<1x32xf32>
    %208 = vector.extract_strided_slice %201 {offsets = [6, 0], sizes = [1, 32], strides = [1, 1]} : vector<8x128xf32> to vector<1x32xf32>
    %209 = vector.extract_strided_slice %201 {offsets = [7, 0], sizes = [1, 32], strides = [1, 1]} : vector<8x128xf32> to vector<1x32xf32>
    %c1_66 = arith.constant 1 : index
    %c0_67 = arith.constant 0 : index
    %c0_68 = arith.constant 0 : index
    %210 = vector.load %arg6[%c1_66, %c0_67, %c0_68] : memref<2x32x96xf32, #tpu.memory_space<vmem>>, vector<1x32x96xf32>
    %211 = vector.shape_cast %210 : vector<1x32x96xf32> to vector<32x96xf32>
    %c1_69 = arith.constant 1 : index
    %c0_70 = arith.constant 0 : index
    %c0_71 = arith.constant 0 : index
    %212 = vector.load %arg7[%c1_69, %c0_70, %c0_71] : memref<2x32x32xf32, #tpu.memory_space<vmem>>, vector<1x32x32xf32>
    %213 = vector.shape_cast %212 : vector<1x32x32xf32> to vector<32x32xf32>
    %cst_72 = arith.constant dense<0.000000e+00> : vector<16x96xf32>
    %214 = tpu.matmul %199, %211, %cst_72 {dimension_numbers = #tpu.dot_dimension_numbers<[1], [0], [0], [1], [0, 0, 1, 1], [], []>} : vector<16x32xf32>, vector<32x96xf32>, vector<16x96xf32> -> vector<16x96xf32>
    %215 = vector.broadcast %202 : vector<1x96xf32> to vector<16x96xf32>
    %216 = arith.addf %214, %215 : vector<16x96xf32>
    %217 = vector.extract_strided_slice %216 {offsets = [0, 0], sizes = [16, 8], strides = [1, 1]} : vector<16x96xf32> to vector<16x8xf32>
    %218 = vector.shape_cast %217 : vector<16x8xf32> to vector<2x8x8xf32>
    %219 = vector.extract_strided_slice %216 {offsets = [0, 32], sizes = [16, 8], strides = [1, 1]} : vector<16x96xf32> to vector<16x8xf32>
    %220 = vector.shape_cast %219 : vector<16x8xf32> to vector<2x8x8xf32>
    %221 = vector.extract_strided_slice %216 {offsets = [0, 64], sizes = [16, 8], strides = [1, 1]} : vector<16x96xf32> to vector<16x8xf32>
    %222 = vector.shape_cast %221 : vector<16x8xf32> to vector<2x8x8xf32>
    "tpu.trace_start"() <{level = 10 : i32, message = "bqk,bsk->bqs"}> : () -> ()
    %cst_73 = arith.constant dense<0.000000e+00> : vector<2x8x8xf32>
    %223 = tpu.matmul %218, %220, %cst_73 {dimension_numbers = #tpu.dot_dimension_numbers<[2], [2], [1], [1], [0, 0, 0, 1, 1, 1], [0], [0]>} : vector<2x8x8xf32>, vector<2x8x8xf32>, vector<2x8x8xf32> -> vector<2x8x8xf32>
    "tpu.trace_stop"() : () -> ()
    %cst_74 = arith.constant 0.353553385 : f32
    %224 = vector.broadcast %cst_74 : f32 to vector<2x8x8xf32>
    %225 = arith.mulf %223, %224 : vector<2x8x8xf32>
    %226 = vector.shape_cast %5 : vector<2x8xf32> to vector<2x1x8xf32>
    %227 = vector.broadcast %226 : vector<2x1x8xf32> to vector<2x8x8xf32>
    %228 = arith.addf %225, %227 : vector<2x8x8xf32>
    %cst_75 = arith.constant dense<0xFF800000> : vector<2x8xf32>
    %229 = vector.multi_reduction <maximumf>, %228, %cst_75 [2] : vector<2x8x8xf32> to vector<2x8xf32>
    %230 = vector.shape_cast %229 : vector<2x8xf32> to vector<2x8x1xf32>
    %231 = vector.broadcast %230 : vector<2x8x1xf32> to vector<2x8x8xf32>
    %232 = arith.subf %228, %231 : vector<2x8x8xf32>
    %233 = math.exp %232 : vector<2x8x8xf32>
    %cst_76 = arith.constant dense<0.000000e+00> : vector<2x8xf32>
    %234 = vector.multi_reduction <add>, %233, %cst_76 [2] : vector<2x8x8xf32> to vector<2x8xf32>
    %235 = vector.shape_cast %234 : vector<2x8xf32> to vector<2x8x1xf32>
    %236 = tpu.reciprocal %235 {approx = true} : vector<2x8x1xf32> -> vector<2x8x1xf32>
    %237 = vector.broadcast %236 : vector<2x8x1xf32> to vector<2x8x8xf32>
    %238 = arith.mulf %233, %237 : vector<2x8x8xf32>
    "tpu.trace_start"() <{level = 10 : i32, message = "bqs,bsk->bqk"}> : () -> ()
    %cst_77 = arith.constant dense<0.000000e+00> : vector<2x8x8xf32>
    %239 = tpu.matmul %238, %222, %cst_77 {dimension_numbers = #tpu.dot_dimension_numbers<[2], [1], [1], [2], [0, 0, 0, 1, 1, 2], [0], [0]>} : vector<2x8x8xf32>, vector<2x8x8xf32>, vector<2x8x8xf32> -> vector<2x8x8xf32>
    "tpu.trace_stop"() : () -> ()
    %240 = vector.shape_cast %239 : vector<2x8x8xf32> to vector<16x8xf32>
    %241 = vector.extract_strided_slice %213 {offsets = [0, 0], sizes = [8, 32], strides = [1, 1]} : vector<32x32xf32> to vector<8x32xf32>
    %cst_78 = arith.constant dense<0.000000e+00> : vector<16x32xf32>
    %242 = tpu.matmul %240, %241, %cst_78 {dimension_numbers = #tpu.dot_dimension_numbers<[1], [0], [0], [1], [0, 0, 1, 1], [], []>} : vector<16x8xf32>, vector<8x32xf32>, vector<16x32xf32> -> vector<16x32xf32>
    %243 = vector.extract_strided_slice %216 {offsets = [0, 8], sizes = [16, 8], strides = [1, 1]} : vector<16x96xf32> to vector<16x8xf32>
    %244 = vector.shape_cast %243 : vector<16x8xf32> to vector<2x8x8xf32>
    %245 = vector.extract_strided_slice %216 {offsets = [0, 40], sizes = [16, 8], strides = [1, 1]} : vector<16x96xf32> to vector<16x8xf32>
    %246 = vector.shape_cast %245 : vector<16x8xf32> to vector<2x8x8xf32>
    %247 = vector.extract_strided_slice %216 {offsets = [0, 72], sizes = [16, 8], strides = [1, 1]} : vector<16x96xf32> to vector<16x8xf32>
    %248 = vector.shape_cast %247 : vector<16x8xf32> to vector<2x8x8xf32>
    "tpu.trace_start"() <{level = 10 : i32, message = "bqk,bsk->bqs"}> : () -> ()
    %cst_79 = arith.constant dense<0.000000e+00> : vector<2x8x8xf32>
    %249 = tpu.matmul %244, %246, %cst_79 {dimension_numbers = #tpu.dot_dimension_numbers<[2], [2], [1], [1], [0, 0, 0, 1, 1, 1], [0], [0]>} : vector<2x8x8xf32>, vector<2x8x8xf32>, vector<2x8x8xf32> -> vector<2x8x8xf32>
    "tpu.trace_stop"() : () -> ()
    %cst_80 = arith.constant 0.353553385 : f32
    %250 = vector.broadcast %cst_80 : f32 to vector<2x8x8xf32>
    %251 = arith.mulf %249, %250 : vector<2x8x8xf32>
    %252 = vector.shape_cast %5 : vector<2x8xf32> to vector<2x1x8xf32>
    %253 = vector.broadcast %252 : vector<2x1x8xf32> to vector<2x8x8xf32>
    %254 = arith.addf %251, %253 : vector<2x8x8xf32>
    %cst_81 = arith.constant dense<0xFF800000> : vector<2x8xf32>
    %255 = vector.multi_reduction <maximumf>, %254, %cst_81 [2] : vector<2x8x8xf32> to vector<2x8xf32>
    %256 = vector.shape_cast %255 : vector<2x8xf32> to vector<2x8x1xf32>
    %257 = vector.broadcast %256 : vector<2x8x1xf32> to vector<2x8x8xf32>
    %258 = arith.subf %254, %257 : vector<2x8x8xf32>
    %259 = math.exp %258 : vector<2x8x8xf32>
    %cst_82 = arith.constant dense<0.000000e+00> : vector<2x8xf32>
    %260 = vector.multi_reduction <add>, %259, %cst_82 [2] : vector<2x8x8xf32> to vector<2x8xf32>
    %261 = vector.shape_cast %260 : vector<2x8xf32> to vector<2x8x1xf32>
    %262 = tpu.reciprocal %261 {approx = true} : vector<2x8x1xf32> -> vector<2x8x1xf32>
    %263 = vector.broadcast %262 : vector<2x8x1xf32> to vector<2x8x8xf32>
    %264 = arith.mulf %259, %263 : vector<2x8x8xf32>
    "tpu.trace_start"() <{level = 10 : i32, message = "bqs,bsk->bqk"}> : () -> ()
    %cst_83 = arith.constant dense<0.000000e+00> : vector<2x8x8xf32>
    %265 = tpu.matmul %264, %248, %cst_83 {dimension_numbers = #tpu.dot_dimension_numbers<[2], [1], [1], [2], [0, 0, 0, 1, 1, 2], [0], [0]>} : vector<2x8x8xf32>, vector<2x8x8xf32>, vector<2x8x8xf32> -> vector<2x8x8xf32>
    "tpu.trace_stop"() : () -> ()
    %266 = vector.shape_cast %265 : vector<2x8x8xf32> to vector<16x8xf32>
    %267 = vector.extract_strided_slice %213 {offsets = [8, 0], sizes = [8, 32], strides = [1, 1]} : vector<32x32xf32> to vector<8x32xf32>
    %cst_84 = arith.constant dense<0.000000e+00> : vector<16x32xf32>
    %268 = tpu.matmul %266, %267, %cst_84 {dimension_numbers = #tpu.dot_dimension_numbers<[1], [0], [0], [1], [0, 0, 1, 1], [], []>} : vector<16x8xf32>, vector<8x32xf32>, vector<16x32xf32> -> vector<16x32xf32>
    %269 = arith.addf %242, %268 : vector<16x32xf32>
    %270 = vector.extract_strided_slice %216 {offsets = [0, 16], sizes = [16, 8], strides = [1, 1]} : vector<16x96xf32> to vector<16x8xf32>
    %271 = vector.shape_cast %270 : vector<16x8xf32> to vector<2x8x8xf32>
    %272 = vector.extract_strided_slice %216 {offsets = [0, 48], sizes = [16, 8], strides = [1, 1]} : vector<16x96xf32> to vector<16x8xf32>
    %273 = vector.shape_cast %272 : vector<16x8xf32> to vector<2x8x8xf32>
    %274 = vector.extract_strided_slice %216 {offsets = [0, 80], sizes = [16, 8], strides = [1, 1]} : vector<16x96xf32> to vector<16x8xf32>
    %275 = vector.shape_cast %274 : vector<16x8xf32> to vector<2x8x8xf32>
    "tpu.trace_start"() <{level = 10 : i32, message = "bqk,bsk->bqs"}> : () -> ()
    %cst_85 = arith.constant dense<0.000000e+00> : vector<2x8x8xf32>
    %276 = tpu.matmul %271, %273, %cst_85 {dimension_numbers = #tpu.dot_dimension_numbers<[2], [2], [1], [1], [0, 0, 0, 1, 1, 1], [0], [0]>} : vector<2x8x8xf32>, vector<2x8x8xf32>, vector<2x8x8xf32> -> vector<2x8x8xf32>
    "tpu.trace_stop"() : () -> ()
    %cst_86 = arith.constant 0.353553385 : f32
    %277 = vector.broadcast %cst_86 : f32 to vector<2x8x8xf32>
    %278 = arith.mulf %276, %277 : vector<2x8x8xf32>
    %279 = vector.shape_cast %5 : vector<2x8xf32> to vector<2x1x8xf32>
    %280 = vector.broadcast %279 : vector<2x1x8xf32> to vector<2x8x8xf32>
    %281 = arith.addf %278, %280 : vector<2x8x8xf32>
    %cst_87 = arith.constant dense<0xFF800000> : vector<2x8xf32>
    %282 = vector.multi_reduction <maximumf>, %281, %cst_87 [2] : vector<2x8x8xf32> to vector<2x8xf32>
    %283 = vector.shape_cast %282 : vector<2x8xf32> to vector<2x8x1xf32>
    %284 = vector.broadcast %283 : vector<2x8x1xf32> to vector<2x8x8xf32>
    %285 = arith.subf %281, %284 : vector<2x8x8xf32>
    %286 = math.exp %285 : vector<2x8x8xf32>
    %cst_88 = arith.constant dense<0.000000e+00> : vector<2x8xf32>
    %287 = vector.multi_reduction <add>, %286, %cst_88 [2] : vector<2x8x8xf32> to vector<2x8xf32>
    %288 = vector.shape_cast %287 : vector<2x8xf32> to vector<2x8x1xf32>
    %289 = tpu.reciprocal %288 {approx = true} : vector<2x8x1xf32> -> vector<2x8x1xf32>
    %290 = vector.broadcast %289 : vector<2x8x1xf32> to vector<2x8x8xf32>
    %291 = arith.mulf %286, %290 : vector<2x8x8xf32>
    "tpu.trace_start"() <{level = 10 : i32, message = "bqs,bsk->bqk"}> : () -> ()
    %cst_89 = arith.constant dense<0.000000e+00> : vector<2x8x8xf32>
    %292 = tpu.matmul %291, %275, %cst_89 {dimension_numbers = #tpu.dot_dimension_numbers<[2], [1], [1], [2], [0, 0, 0, 1, 1, 2], [0], [0]>} : vector<2x8x8xf32>, vector<2x8x8xf32>, vector<2x8x8xf32> -> vector<2x8x8xf32>
    "tpu.trace_stop"() : () -> ()
    %293 = vector.shape_cast %292 : vector<2x8x8xf32> to vector<16x8xf32>
    %294 = vector.extract_strided_slice %213 {offsets = [16, 0], sizes = [8, 32], strides = [1, 1]} : vector<32x32xf32> to vector<8x32xf32>
    %cst_90 = arith.constant dense<0.000000e+00> : vector<16x32xf32>
    %295 = tpu.matmul %293, %294, %cst_90 {dimension_numbers = #tpu.dot_dimension_numbers<[1], [0], [0], [1], [0, 0, 1, 1], [], []>} : vector<16x8xf32>, vector<8x32xf32>, vector<16x32xf32> -> vector<16x32xf32>
    %296 = arith.addf %269, %295 : vector<16x32xf32>
    %297 = vector.extract_strided_slice %216 {offsets = [0, 24], sizes = [16, 8], strides = [1, 1]} : vector<16x96xf32> to vector<16x8xf32>
    %298 = vector.shape_cast %297 : vector<16x8xf32> to vector<2x8x8xf32>
    %299 = vector.extract_strided_slice %216 {offsets = [0, 56], sizes = [16, 8], strides = [1, 1]} : vector<16x96xf32> to vector<16x8xf32>
    %300 = vector.shape_cast %299 : vector<16x8xf32> to vector<2x8x8xf32>
    %301 = vector.extract_strided_slice %216 {offsets = [0, 88], sizes = [16, 8], strides = [1, 1]} : vector<16x96xf32> to vector<16x8xf32>
    %302 = vector.shape_cast %301 : vector<16x8xf32> to vector<2x8x8xf32>
    "tpu.trace_start"() <{level = 10 : i32, message = "bqk,bsk->bqs"}> : () -> ()
    %cst_91 = arith.constant dense<0.000000e+00> : vector<2x8x8xf32>
    %303 = tpu.matmul %298, %300, %cst_91 {dimension_numbers = #tpu.dot_dimension_numbers<[2], [2], [1], [1], [0, 0, 0, 1, 1, 1], [0], [0]>} : vector<2x8x8xf32>, vector<2x8x8xf32>, vector<2x8x8xf32> -> vector<2x8x8xf32>
    "tpu.trace_stop"() : () -> ()
    %cst_92 = arith.constant 0.353553385 : f32
    %304 = vector.broadcast %cst_92 : f32 to vector<2x8x8xf32>
    %305 = arith.mulf %303, %304 : vector<2x8x8xf32>
    %306 = vector.shape_cast %5 : vector<2x8xf32> to vector<2x1x8xf32>
    %307 = vector.broadcast %306 : vector<2x1x8xf32> to vector<2x8x8xf32>
    %308 = arith.addf %305, %307 : vector<2x8x8xf32>
    %cst_93 = arith.constant dense<0xFF800000> : vector<2x8xf32>
    %309 = vector.multi_reduction <maximumf>, %308, %cst_93 [2] : vector<2x8x8xf32> to vector<2x8xf32>
    %310 = vector.shape_cast %309 : vector<2x8xf32> to vector<2x8x1xf32>
    %311 = vector.broadcast %310 : vector<2x8x1xf32> to vector<2x8x8xf32>
    %312 = arith.subf %308, %311 : vector<2x8x8xf32>
    %313 = math.exp %312 : vector<2x8x8xf32>
    %cst_94 = arith.constant dense<0.000000e+00> : vector<2x8xf32>
    %314 = vector.multi_reduction <add>, %313, %cst_94 [2] : vector<2x8x8xf32> to vector<2x8xf32>
    %315 = vector.shape_cast %314 : vector<2x8xf32> to vector<2x8x1xf32>
    %316 = tpu.reciprocal %315 {approx = true} : vector<2x8x1xf32> -> vector<2x8x1xf32>
    %317 = vector.broadcast %316 : vector<2x8x1xf32> to vector<2x8x8xf32>
    %318 = arith.mulf %313, %317 : vector<2x8x8xf32>
    "tpu.trace_start"() <{level = 10 : i32, message = "bqs,bsk->bqk"}> : () -> ()
    %cst_95 = arith.constant dense<0.000000e+00> : vector<2x8x8xf32>
    %319 = tpu.matmul %318, %302, %cst_95 {dimension_numbers = #tpu.dot_dimension_numbers<[2], [1], [1], [2], [0, 0, 0, 1, 1, 2], [0], [0]>} : vector<2x8x8xf32>, vector<2x8x8xf32>, vector<2x8x8xf32> -> vector<2x8x8xf32>
    "tpu.trace_stop"() : () -> ()
    %320 = vector.shape_cast %319 : vector<2x8x8xf32> to vector<16x8xf32>
    %321 = vector.extract_strided_slice %213 {offsets = [24, 0], sizes = [8, 32], strides = [1, 1]} : vector<32x32xf32> to vector<8x32xf32>
    %cst_96 = arith.constant dense<0.000000e+00> : vector<16x32xf32>
    %322 = tpu.matmul %320, %321, %cst_96 {dimension_numbers = #tpu.dot_dimension_numbers<[1], [0], [0], [1], [0, 0, 1, 1], [], []>} : vector<16x8xf32>, vector<8x32xf32>, vector<16x32xf32> -> vector<16x32xf32>
    %323 = arith.addf %296, %322 : vector<16x32xf32>
    %324 = arith.addf %199, %323 : vector<16x32xf32>
    %325 = vector.broadcast %203 : vector<1x32xf32> to vector<16x32xf32>
    %326 = arith.addf %324, %325 : vector<16x32xf32>
    %cst_97 = arith.constant dense<0.000000e+00> : vector<16xf32>
    %327 = vector.multi_reduction <add>, %326, %cst_97 [1] : vector<16x32xf32> to vector<16xf32>
    %328 = vector.shape_cast %327 : vector<16xf32> to vector<16x1xf32>
    %cst_98 = arith.constant 3.200000e+01 : f32
    %329 = vector.broadcast %cst_98 : f32 to vector<16x1xf32>
    %330 = arith.divf %328, %329 : vector<16x1xf32>
    %331 = arith.mulf %326, %326 : vector<16x32xf32>
    %cst_99 = arith.constant dense<0.000000e+00> : vector<16xf32>
    %332 = vector.multi_reduction <add>, %331, %cst_99 [1] : vector<16x32xf32> to vector<16xf32>
    %333 = vector.shape_cast %332 : vector<16xf32> to vector<16x1xf32>
    %cst_100 = arith.constant 3.200000e+01 : f32
    %334 = vector.broadcast %cst_100 : f32 to vector<16x1xf32>
    %335 = arith.divf %333, %334 : vector<16x1xf32>
    %336 = arith.mulf %330, %330 : vector<16x1xf32>
    %337 = arith.subf %335, %336 : vector<16x1xf32>
    %338 = vector.broadcast %330 : vector<16x1xf32> to vector<16x32xf32>
    %339 = arith.subf %326, %338 : vector<16x32xf32>
    %cst_101 = arith.constant 9.99999974E-6 : f32
    %340 = vector.broadcast %cst_101 : f32 to vector<16x1xf32>
    %341 = arith.addf %337, %340 : vector<16x1xf32>
    %342 = math.rsqrt %341 : vector<16x1xf32>
    %343 = vector.broadcast %342 : vector<16x1xf32> to vector<16x32xf32>
    %344 = arith.mulf %339, %343 : vector<16x32xf32>
    %345 = vector.broadcast %204 : vector<1x32xf32> to vector<16x32xf32>
    %346 = arith.mulf %344, %345 : vector<16x32xf32>
    %347 = vector.broadcast %205 : vector<1x32xf32> to vector<16x32xf32>
    %348 = arith.addf %346, %347 : vector<16x32xf32>
    %c1_102 = arith.constant 1 : index
    %c0_103 = arith.constant 0 : index
    %c0_104 = arith.constant 0 : index
    %349 = vector.load %arg8[%c1_102, %c0_103, %c0_104] : memref<2x32x64xf32, #tpu.memory_space<vmem>>, vector<1x32x64xf32>
    %350 = vector.shape_cast %349 : vector<1x32x64xf32> to vector<32x64xf32>
    %cst_105 = arith.constant dense<0.000000e+00> : vector<16x64xf32>
    %351 = tpu.matmul %348, %350, %cst_105 {dimension_numbers = #tpu.dot_dimension_numbers<[1], [0], [0], [1], [0, 0, 1, 1], [], []>} : vector<16x32xf32>, vector<32x64xf32>, vector<16x64xf32> -> vector<16x64xf32>
    %352 = vector.broadcast %206 : vector<1x64xf32> to vector<16x64xf32>
    %353 = arith.addf %351, %352 : vector<16x64xf32>
    %cst_106 = arith.constant 0.000000e+00 : f32
    %354 = vector.broadcast %cst_106 : f32 to vector<16x64xf32>
    %355 = arith.maximumf %353, %354 : vector<16x64xf32>
    %c1_107 = arith.constant 1 : index
    %c0_108 = arith.constant 0 : index
    %c0_109 = arith.constant 0 : index
    %356 = vector.load %arg9[%c1_107, %c0_108, %c0_109] : memref<2x64x32xf32, #tpu.memory_space<vmem>>, vector<1x64x32xf32>
    %357 = vector.shape_cast %356 : vector<1x64x32xf32> to vector<64x32xf32>
    %cst_110 = arith.constant dense<0.000000e+00> : vector<16x32xf32>
    %358 = tpu.matmul %355, %357, %cst_110 {dimension_numbers = #tpu.dot_dimension_numbers<[1], [0], [0], [1], [0, 0, 1, 1], [], []>} : vector<16x64xf32>, vector<64x32xf32>, vector<16x32xf32> -> vector<16x32xf32>
    %359 = vector.broadcast %207 : vector<1x32xf32> to vector<16x32xf32>
    %360 = arith.addf %358, %359 : vector<16x32xf32>
    %361 = arith.addf %348, %360 : vector<16x32xf32>
    %cst_111 = arith.constant dense<0.000000e+00> : vector<16xf32>
    %362 = vector.multi_reduction <add>, %361, %cst_111 [1] : vector<16x32xf32> to vector<16xf32>
    %363 = vector.shape_cast %362 : vector<16xf32> to vector<16x1xf32>
    %cst_112 = arith.constant 3.200000e+01 : f32
    %364 = vector.broadcast %cst_112 : f32 to vector<16x1xf32>
    %365 = arith.divf %363, %364 : vector<16x1xf32>
    %366 = arith.mulf %361, %361 : vector<16x32xf32>
    %cst_113 = arith.constant dense<0.000000e+00> : vector<16xf32>
    %367 = vector.multi_reduction <add>, %366, %cst_113 [1] : vector<16x32xf32> to vector<16xf32>
    %368 = vector.shape_cast %367 : vector<16xf32> to vector<16x1xf32>
    %cst_114 = arith.constant 3.200000e+01 : f32
    %369 = vector.broadcast %cst_114 : f32 to vector<16x1xf32>
    %370 = arith.divf %368, %369 : vector<16x1xf32>
    %371 = arith.mulf %365, %365 : vector<16x1xf32>
    %372 = arith.subf %370, %371 : vector<16x1xf32>
    %373 = vector.broadcast %365 : vector<16x1xf32> to vector<16x32xf32>
    %374 = arith.subf %361, %373 : vector<16x32xf32>
    %cst_115 = arith.constant 9.99999974E-6 : f32
    %375 = vector.broadcast %cst_115 : f32 to vector<16x1xf32>
    %376 = arith.addf %372, %375 : vector<16x1xf32>
    %377 = math.rsqrt %376 : vector<16x1xf32>
    %378 = vector.broadcast %377 : vector<16x1xf32> to vector<16x32xf32>
    %379 = arith.mulf %374, %378 : vector<16x32xf32>
    %380 = vector.broadcast %208 : vector<1x32xf32> to vector<16x32xf32>
    %381 = arith.mulf %379, %380 : vector<16x32xf32>
    %382 = vector.broadcast %209 : vector<1x32xf32> to vector<16x32xf32>
    %383 = arith.addf %381, %382 : vector<16x32xf32>
    %cst_116 = arith.constant dense<0.000000e+00> : vector<2xf32>
    %384 = vector.multi_reduction <add>, %0, %cst_116 [1] : vector<2x8xf32> to vector<2xf32>
    %385 = vector.shape_cast %384 : vector<2xf32> to vector<2x1xf32>
    %386 = vector.broadcast %385 : vector<2x1xf32> to vector<2x8xf32>
    %387 = arith.divf %0, %386 : vector<2x8xf32>
    %388 = vector.shape_cast %383 : vector<16x32xf32> to vector<2x8x32xf32>
    %389 = vector.shape_cast %387 : vector<2x8xf32> to vector<2x8x1xf32>
    %390 = vector.broadcast %389 : vector<2x8x1xf32> to vector<2x8x32xf32>
    %391 = arith.mulf %388, %390 : vector<2x8x32xf32>
    %cst_117 = arith.constant dense<0.000000e+00> : vector<2x32xf32>
    %392 = vector.multi_reduction <add>, %391, %cst_117 [1] : vector<2x8x32xf32> to vector<2x32xf32>
    %c0_118 = arith.constant 0 : index
    %c0_119 = arith.constant 0 : index
    %393 = vector.load %arg12[%c0_118, %c0_119] : memref<2x128xf32, #tpu.memory_space<vmem>>, vector<2x128xf32>
    %c0_120 = arith.constant 0 : index
    %c0_121 = arith.constant 0 : index
    %394 = vector.load %arg10[%c0_120, %c0_121] : memref<32x16xf32, #tpu.memory_space<vmem>>, vector<32x16xf32>
    %cst_122 = arith.constant dense<0.000000e+00> : vector<2x16xf32>
    %395 = tpu.matmul %392, %394, %cst_122 {dimension_numbers = #tpu.dot_dimension_numbers<[1], [0], [0], [1], [0, 0, 1, 1], [], []>} : vector<2x32xf32>, vector<32x16xf32>, vector<2x16xf32> -> vector<2x16xf32>
    %396 = vector.extract_strided_slice %393 {offsets = [0, 0], sizes = [1, 16], strides = [1, 1]} : vector<2x128xf32> to vector<1x16xf32>
    %397 = vector.broadcast %396 : vector<1x16xf32> to vector<2x16xf32>
    %398 = arith.addf %395, %397 : vector<2x16xf32>
    %cst_123 = arith.constant 0.000000e+00 : f32
    %399 = vector.broadcast %cst_123 : f32 to vector<2x16xf32>
    %400 = arith.maximumf %398, %399 : vector<2x16xf32>
    %c0_124 = arith.constant 0 : index
    %c0_125 = arith.constant 0 : index
    %401 = vector.load %arg11[%c0_124, %c0_125] : memref<16x128xf32, #tpu.memory_space<vmem>>, vector<16x128xf32>
    %cst_126 = arith.constant dense<0.000000e+00> : vector<2x128xf32>
    %402 = tpu.matmul %400, %401, %cst_126 {dimension_numbers = #tpu.dot_dimension_numbers<[1], [0], [0], [1], [0, 0, 1, 1], [], []>} : vector<2x16xf32>, vector<16x128xf32>, vector<2x128xf32> -> vector<2x128xf32>
    %403 = vector.extract_strided_slice %393 {offsets = [1, 0], sizes = [1, 128], strides = [1, 1]} : vector<2x128xf32> to vector<1x128xf32>
    %404 = vector.broadcast %403 : vector<1x128xf32> to vector<2x128xf32>
    %405 = arith.addf %402, %404 : vector<2x128xf32>
    %c0_127 = arith.constant 0 : index
    %c0_128 = arith.constant 0 : index
    %406 = vector.load %arg13[%c0_127, %c0_128] : memref<2x128xf32, #tpu.memory_space<vmem>>, vector<2x128xf32>
    tpu.vector_store %arg13[%c0_127, %c0_128], %405 {strides = array<i32>} : memref<2x128xf32, #tpu.memory_space<vmem>>, vector<2x128xf32>,
    return
  }
  func.func @transform_0(%arg0: i32) -> (i32, i32) {
    %c0_i32 = arith.constant 0 : i32
    %c0_i32_0 = arith.constant 0 : i32
    return %arg0, %c0_i32 : i32, i32
  }
  func.func @transform_1(%arg0: i32) -> (i32, i32, i32) {
    %c0_i32 = arith.constant 0 : i32
    %c0_i32_0 = arith.constant 0 : i32
    %c0_i32_1 = arith.constant 0 : i32
    return %arg0, %c0_i32, %c0_i32_0 : i32, i32, i32
  }
  func.func @transform_2(%arg0: i32) -> (i32, i32) {
    %c0_i32 = arith.constant 0 : i32
    %c0_i32_0 = arith.constant 0 : i32
    %c0_i32_1 = arith.constant 0 : i32
    return %c0_i32, %c0_i32_0 : i32, i32
  }
  func.func @transform_3(%arg0: i32) -> (i32, i32) {
    %c0_i32 = arith.constant 0 : i32
    %c0_i32_0 = arith.constant 0 : i32
    %c0_i32_1 = arith.constant 0 : i32
    return %c0_i32, %c0_i32_0 : i32, i32
  }
  func.func @transform_4(%arg0: i32) -> (i32, i32, i32) {
    %c0_i32 = arith.constant 0 : i32
    %c0_i32_0 = arith.constant 0 : i32
    %c0_i32_1 = arith.constant 0 : i32
    %c0_i32_2 = arith.constant 0 : i32
    return %c0_i32, %c0_i32_0, %c0_i32_1 : i32, i32, i32
  }
  func.func @transform_5(%arg0: i32) -> (i32, i32, i32) {
    %c0_i32 = arith.constant 0 : i32
    %c0_i32_0 = arith.constant 0 : i32
    %c0_i32_1 = arith.constant 0 : i32
    %c0_i32_2 = arith.constant 0 : i32
    return %c0_i32, %c0_i32_0, %c0_i32_1 : i32, i32, i32
  }
  func.func @transform_6(%arg0: i32) -> (i32, i32, i32) {
    %c0_i32 = arith.constant 0 : i32
    %c0_i32_0 = arith.constant 0 : i32
    %c0_i32_1 = arith.constant 0 : i32
    %c0_i32_2 = arith.constant 0 : i32
    return %c0_i32, %c0_i32_0, %c0_i32_1 : i32, i32, i32
  }
  func.func @transform_7(%arg0: i32) -> (i32, i32, i32) {
    %c0_i32 = arith.constant 0 : i32
    %c0_i32_0 = arith.constant 0 : i32
    %c0_i32_1 = arith.constant 0 : i32
    %c0_i32_2 = arith.constant 0 : i32
    return %c0_i32, %c0_i32_0, %c0_i32_1 : i32, i32, i32
  }
  func.func @transform_8(%arg0: i32) -> (i32, i32, i32) {
    %c0_i32 = arith.constant 0 : i32
    %c0_i32_0 = arith.constant 0 : i32
    %c0_i32_1 = arith.constant 0 : i32
    %c0_i32_2 = arith.constant 0 : i32
    return %c0_i32, %c0_i32_0, %c0_i32_1 : i32, i32, i32
  }
  func.func @transform_9(%arg0: i32) -> (i32, i32) {
    %c0_i32 = arith.constant 0 : i32
    %c0_i32_0 = arith.constant 0 : i32
    %c0_i32_1 = arith.constant 0 : i32
    return %c0_i32, %c0_i32_0 : i32, i32
  }
  func.func @transform_10(%arg0: i32) -> (i32, i32) {
    %c0_i32 = arith.constant 0 : i32
    %c0_i32_0 = arith.constant 0 : i32
    %c0_i32_1 = arith.constant 0 : i32
    return %c0_i32, %c0_i32_0 : i32, i32
  }
  func.func @transform_11(%arg0: i32) -> (i32, i32) {
    %c0_i32 = arith.constant 0 : i32
    %c0_i32_0 = arith.constant 0 : i32
    %c0_i32_1 = arith.constant 0 : i32
    return %c0_i32, %c0_i32_0 : i32, i32
  }
  func.func @transform_12(%arg0: i32) -> (i32, i32) {
    %c0_i32 = arith.constant 0 : i32
    %c0_i32_0 = arith.constant 0 : i32
    return %arg0, %c0_i32 : i32, i32
  }
}

</mosaic_0001>

<bundles_post_ra>
// kernel: traisformer_forward.1
= control target key start
LH: loop header
LB: loop body
LE: loop exit
PB: predicated region body
PF: predicated region fallthrough
CT: control target
= control target key end

     0   :  { %vm49_vm0 = vcmask 130048   ;;  %s2810_s0 = inlined_call_operand.vmem [shape: f32[2,8], index: 0, kind: input, shape index: {}]   ;;  %s2811_s1 = inlined_call_operand.vmem [shape: f32[2,8,16], index: 1, kind: input, shape index: {}]   ;;  %s2812_s2 = inlined_call_operand.vmem [shape: f32[8,32], index: 2, kind: input, shape index: {}]   ;;  %s2813_s3 = inlined_call_operand.vmem [shape: f32[16,32], index: 3, kind: input, shape index: {}]   ;;  %s2814_s4 = inlined_call_operand.vmem [shape: f32[2,8,128], index: 4, kind: input, shape index: {}]   ;;  %s2815_s5 = inlined_call_operand.vmem [shape: f32[2,32,96], index: 5, kind: input, shape index: {}]   ;;  %s2816_s6 = inlined_call_operand.vmem [shape: f32[2,32,32], index: 6, kind: input, shape index: {}]   ;;  %s2817_s7 = inlined_call_operand.vmem [shape: f32[2,32,64], index: 7, kind: input, shape index: {}]   ;;  %s2818_s8 = inlined_call_operand.vmem [shape: f32[2,64,32], index: 8, kind: input, shape index: {}]   ;;  %s2819_s9 = inlined_call_operand.vmem [shape: f32[32,16], index: 9, kind: input, shape index: {}]   ;;  %s2820_s10 = inlined_call_operand.vmem [shape: f32[16,128], index: 10, kind: input, shape index: {}]   ;;  %s2821_s11 = inlined_call_operand.vmem [shape: f32[2,128], index: 11, kind: input, shape index: {}]   ;;  %s2822_s12 = inlined_call_operand.hbm [shape: f32[2,128], index: 12, kind: output, shape index: {}]  }
   0x1   :  { %v48_v0 = vld [vmem:[%s2813_s3 + $0x8] sm:$0xff]  ;;  %v47_v1 = vld [vmem:[%s2813_s3] sm:$0xff]  ;;  %v86_v3 = vld [vmem:[%s2815_s5 + $0x18] sm:$0xff] }
   0x2   :  { %70 = vmatpush.msra.mxu0 %v48_v0  ;;  %v45_v2 = vld [vmem:[%s2811_s1] sm:$0xff]  ;;  %v85_v4 = vld [vmem:[%s2815_s5 + $0x10] sm:$0xff]  ;;  %111 = vmatpush.msra.mxu1 %v86_v3 }
   0x3   :  { %17 = vsyncpa [#allocation3], 0  ;;  %v46_v5 = vld [vmem:[%s2811_s1 + $0x8] sm:$0xff]  ;;  %v83_v7 = vld [vmem:[%s2815_s5] sm:$0xff]  ;;  %vm92_vm1 = vcmask 261120   ;;  %s2221_s21 = smov 96  }
   0x4   :  { %71 = vmatpush.msra.mxu0 %v47_v1  ;;  %112 = vmatpush.msra.mxu1 %v85_v4  ;;  %v84_v6 = vld [vmem:[%s2815_s5 + $0x8] sm:$0xff]  ;;  %v79_v8 = vld [vmem:[%s2812_s2] sm:$0xff]  ;;  %s2220_s2 = smov 88   ;;  %s2222_s22 = smov 120   ;;  %vm125_vm2 = vcmask 64512   ;;  %vm894_vm11 = vcmask 523264  }
   0x5   :  { %1992 = vmatmul.msk.f32.vlgmr.msra.gmra.mxu0 %vm49_vm0, %v45_v2  ;;  %v2339_v13 = vld [vmem:[%s2814_s4] sm:$0xff]  ;;  %s2223_s23 = smov 64   ;;  %v2224_v25 = vmov -1e+30   ;;  %s2225_s26 = smov 112  }
   0x6   :  { %113 = vmatpush.msra.mxu1 %v84_v6  ;;  %v91_v14 = vperm.slane %v2339_v13, 0  ;;  %v42_v24 = vld [vmem:[%s2810_s0] sm:$0x3]  ;;  %s2226_s27 = smov 56   ;;  %s2227_s28 = smov 80  }
   0x7   :  { %vm43_vm3 = vcmp.gt.f32.partialorder %v42_v24, 0.0  ;;  %s2228_s29 = smov 72   ;;  %v87_v1 = vld [vmem:[%s2816_s6] sm:$0xff]  ;;  %s2229_s13 = smov 104  }
   0x8   :  { %114 = vmatpush.msra.mxu1 %v83_v7  ;;  %v44_v26 = vsel %vm43_vm3, 0.0, %v2224_v25  ;;  %s2230_s16 = smov 48   ;;  %s2231_s17 = smov 40  }
   0x9   :  { %v2369_v27 = vperm.slane %v44_v26, 0  ;;  %v180_v34 = vrot.slane %v44_v26, 1  ;;  %s2233_s20 = smov [#allocation2]   ;;  %s1983_s30 = sshll.u32 %s2822_s12, 4  ;;  %s1984_s30 = int_to_ptr.hbm [resolvable:$true] %s1983_s30 }
   0xa   :  { %s1981_s24 = sshll.u32 %s2233_s20, 4  ;;  %s1982_s24 = int_to_ptr.vmem [resolvable:$true] %s1981_s24 }
   0xb   :  { %v2375_v38 = vperm.slane %v180_v34, 0 }
   0xd   :  { %1993 = vmatmul.msk.f32.gmra.mxu0 %vm49_vm0, %v46_v5 }
  0x82   :  { %v73_v9 = vpop.f32.mrf.mxu0 }
  0x83   :  { %v2328_v10 = vadd.f32 %v79_v8, %v73_v9 }
  0x85   :  { %1994 = vmatmul.msk.f32.vlgmr.msra.gmra.mxu1 %vm92_vm1, %v2328_v10 }
  0x8a   :  { %v76_v11 = vpop.f32.mrf.mxu0 }
  0x8b   :  { %v2332_v12 = vadd.f32 %v79_v8, %v76_v11 }
  0x8d   :  { %1995 = vmatmul.msk.f32.gmra.mxu1 %vm92_vm1, %v2332_v12 }
 0x102   :  { %v116_v15 = vpop.f32.mrf.mxu1 }
 0x103   :  { %v2342_v16 = vadd.f32 %v116_v15, %v91_v14 }
 0x105   :  { %263 = vrot.lane.b32.xlu1 %v2342_v16, %s2220_s2  ;;  %123 = vrot.lane.b32.xlu0 %v2342_v16, %s2221_s21 }
 0x10a   :  { %v119_v17 = vpop.f32.mrf.mxu1 }
 0x10b   :  { %v2348_v18 = vadd.f32 %v119_v17, %v91_v14 }
 0x10d   :  { %261 = vrot.lane.b32.xlu1 %v2342_v16, %s2222_s22  ;;  %151 = vrot.lane.b32.xlu0 %v2348_v18, %s2221_s21 }
 0x115   :  { %209 = vrot.lane.b32.xlu0 %v2342_v16, %s2223_s23  ;;  %291 = vrot.lane.b32.xlu1 %v2348_v18, %s2220_s2 }
 0x177   :  { %v264_v19 = vpop.permute.xlu1 %263  ;;  %v124_v20 = vpop.permute.xlu0 %123 }
 0x178   :  { %1996 = vmatpush.xpose.msk.msra.mxu2 %vm125_vm2, %v124_v20  ;;  %2002 = vmatpush.xpose.msk.msrb.mxu0 %vm125_vm2, %v264_v19 }
 0x17b   :  { %1997 = vmatmul.msk.f32.vlgmr.msra.gmra.mxu2 %vm125_vm2, %v2342_v16 }
 0x17f   :  { %v262_v21 = vpop.permute.xlu1 %261  ;;  %v152_v22 = vpop.permute.xlu0 %151 }
 0x180   :  { %1998 = vmatpush.xpose.msk.msra.mxu3 %vm125_vm2, %v152_v22  ;;  %2003 = vmatmul.msk.f32.vlgmr.msrb.gmra.mxu0 %vm125_vm2, %v262_v21  ;;  %v88_v22 = vld [vmem:[%s2816_s6 + $0x8] sm:$0xff] }
 0x181   :  { %416 = vmatpush.msra.mxu0 %v88_v22 }
 0x183   :  { %1999 = vmatmul.msk.f32.vlgmr.msra.gmra.mxu3 %vm125_vm2, %v2348_v18 }
 0x187   :  { %v210_v23 = vpop.permute.xlu0 %209  ;;  %v292_v37 = vpop.permute.xlu1 %291 }
 0x188   :  { %230 = vmatpush.msrb.mxu2 %v210_v23 }
 0x18a   :  { %2004 = vmatpush.xpose.msk.msra.mxu2 %vm125_vm2, %v292_v37 }
 0x1fd   :  { %v286_v28 = vpop.f32.mrf.mxu0 }
 0x1fe   :  { %v317_v29 = vmul.f32 0.35355338, %v286_v28  ;;  %v147_v30 = vpop.f32.mrf.mxu2 }
 0x1ff   :  { %v177_v31 = vmul.f32 0.35355338, %v147_v30 }
 0x200   :  { %v319_v32 = vadd.f32 %v317_v29, %v2369_v27 }
 0x201   :  { %v185_v33 = vadd.f32 %v2369_v27, %v177_v31 }
 0x202   :  { %v321_v35 = vsel %vm125_vm2, %v319_v32, -inf }
 0x203   :  { %322 = vmax.xlane.f32.xlu1 %v321_v35  ;;  %v187_v36 = vsel %vm125_vm2, %v185_v33, -inf }
 0x204   :  { %188 = vmax.xlane.f32.xlu2 %v187_v36 }
 0x206   :  { %v174_v39 = vpop.f32.mrf.mxu3 }
 0x207   :  { %v178_v40 = vmul.f32 0.35355338, %v174_v39 }
 0x209   :  { %v186_v41 = vadd.f32 %v2375_v38, %v178_v40 }
 0x20b   :  { %v190_v42 = vsel %vm125_vm2, %v186_v41, -inf }
 0x20c   :  { %191 = vmax.xlane.f32.xlu0 %v190_v42 }
 0x21c   :  { %235 = vrot.lane.b32.xlu1 %v2348_v18, %s2223_s23 }
 0x224   :  { %453 = vrot.lane.b32.xlu1 %v2342_v16, %s2225_s26 }
 0x276   :  { %v323_v43 = vpop.xlane.xlu1 %322 }
 0x277   :  { %v327_v44 = vsub.f32 %v319_v32, %v323_v43  ;;  %v189_v45 = vpop.xlane.xlu2 %188 }
 0x278   :  { %v193_v46 = vsub.f32 %v185_v33, %v189_v45 }
 0x279   :  { %v329_v47 = vmul.f32 1.442695, %v327_v44 }
 0x27a   :  { %v195_v48 = vmul.f32 1.442695, %v193_v46 }
 0x27b   :  { %2109 = vpow2.f32 %v329_v47 }
 0x27c   :  { %2111 = vpow2.f32 %v195_v48 }
 0x27f   :  { %v192_v54 = vpop.xlane.xlu0 %191 }
 0x280   :  { %v194_v55 = vsub.f32 %v186_v41, %v192_v54 }
 0x281   :  { %v2110_v49 = vpop.eup %2109 }
 0x282   :  { %v2112_v50 = vpop.eup %2111  ;;  %v333_v51 = vsel %vm125_vm2, %v2110_v49, 0.0  ;;  %v197_v56 = vmul.f32 1.442695, %v194_v55 }
 0x283   :  { %334 = vadd.xlane.f32.xlu0 %v333_v51  ;;  %v199_v52 = vsel %vm125_vm2, %v2112_v50, 0.0 }
 0x284   :  { %200 = vadd.xlane.f32.xlu2 %v199_v52  ;;  %2113 = vpow2.f32 %v197_v56 }
 0x28a   :  { %v2114_v57 = vpop.eup %2113 }
 0x28b   :  { %v202_v58 = vsel %vm125_vm2, %v2114_v57, 0.0 }
 0x28e   :  { %v236_v53 = vpop.permute.xlu1 %235 }
 0x28f   :  { %256 = vmatpush.msrb.mxu3 %v236_v53 }
 0x296   :  { %v454_v11 = vpop.permute.xlu1 %453 }
 0x297   :  { %343 = vrot.lane.b32.xlu0 %v2342_v16, %s2226_s27 }
 0x29c   :  { %289 = vrot.lane.b32.xlu2 %v2348_v18, %s2222_s22 }
 0x2c5   :  { %203 = vadd.xlane.f32.xlu2 %v202_v58 }
 0x2dd   :  { %455 = vrot.lane.b32.xlu2 %v2342_v16, %s2227_s28 }
 0x2e5   :  { %369 = vrot.lane.b32.xlu2 %v2348_v18, %s2226_s27 }
 0x2ed   :  { %483 = vrot.lane.b32.xlu2 %v2348_v18, %s2227_s28 }
 0x2f5   :  { %620 = vrot.lane.b32.xlu2 %v2342_v16, %s2228_s29 }
 0x2f6   :  { %v335_v62 = vpop.xlane.xlu0 %334 }
 0x2f7   :  { %v201_v59 = vpop.xlane.xlu2 %200 }
 0x2f8   :  { %2115 = vrcp.f32 %v201_v59 }
 0x2fd   :  { %481 = vrot.lane.b32.xlu2 %v2348_v18, %s2225_s26 }
 0x2fe   :  { %v2116_v60 = vpop.eup %2115 }
 0x2ff   :  { %v207_v61 = vmul.f32 %v2116_v60, %v2112_v50  ;;  %v290_v63 = vpop.permute.xlu2 %289 }
 0x301   :  { %2000 = vmatmul.msk.f32.vlgmr.msrb.gmra.mxu2 %vm125_vm2, %v207_v61 }
 0x302   :  { %445 = vmatpush.msrb.mxu2 %v87_v1 }
 0x309   :  { %2005 = vmatmul.msk.f32.vlgmr.msra.gmra.mxu2 %vm125_vm2, %v290_v63  ;;  %v344_v0 = vpop.permute.xlu0 %343 }
 0x30a   :  { %364 = vmatpush.msra.mxu3 %v344_v0 }
 0x338   :  { %v204_v2 = vpop.xlane.xlu2 %203 }
 0x339   :  { %2117 = vrcp.f32 %v204_v2 }
 0x33a   :  { %2119 = vrcp.f32 %v335_v62 }
 0x33f   :  { %v2118_v3 = vpop.eup %2117 }
 0x340   :  { %v456_v4 = vpop.permute.xlu2 %455  ;;  %v208_v5 = vmul.f32 %v2118_v3, %v2114_v57  ;;  %v2120_v6 = vpop.eup %2119 }
 0x341   :  { %v341_v7 = vmul.f32 %v2120_v6, %v2110_v49 }
 0x342   :  { %2001 = vmatmul.msk.f32.vlgmr.msrb.gmra.mxu3 %vm125_vm2, %v208_v5 }
 0x343   :  { %2012 = vmatpush.xpose.msk.msrb.mxu3 %vm125_vm2, %v456_v4  ;;  %v89_v4 = vld [vmem:[%s2816_s6 + $0x10] sm:$0xff] }
 0x344   :  { %608 = vmatpush.msrb.mxu0 %v89_v4 }
 0x348   :  { %v370_v8 = vpop.permute.xlu2 %369 }
 0x349   :  { %390 = vmatpush.msrb.mxu1 %v370_v8 }
 0x34a   :  { %2006 = vmatmul.msk.f32.vlgmr.msra.gmra.mxu3 %vm125_vm2, %v341_v7 }
 0x350   :  { %v484_v9 = vpop.permute.xlu2 %483 }
 0x351   :  { %2014 = vmatpush.xpose.msk.msra.mxu1 %vm125_vm2, %v484_v9 }
 0x352   :  { %2013 = vmatmul.msk.f32.vlgmr.msrb.gmra.mxu3 %vm125_vm2, %v454_v11 }
 0x358   :  { %v621_v14 = vpop.permute.xlu2 %620 }
 0x359   :  { %2020 = vmatpush.xpose.msk.msra.mxu2 %vm125_vm2, %v621_v14 }
 0x360   :  { %v482_v36 = vpop.permute.xlu2 %481 }
 0x384   :  { %v232_v15 = vpop.f32.mrf.mxu2 }
 0x385   :  { %2010 = vmatmul.msk.f32.vlgmr.msrb.gmra.mxu2 %vm125_vm2, %v232_v15 }
 0x38c   :  { %v314_v17 = vpop.f32.mrf.mxu2 }
 0x38d   :  { %v318_v19 = vmul.f32 0.35355338, %v314_v17 }
 0x38f   :  { %v320_v20 = vadd.f32 %v318_v19, %v2375_v38 }
 0x391   :  { %v324_v21 = vsel %vm125_vm2, %v320_v20, -inf }
 0x392   :  { %325 = vmax.xlane.f32.xlu0 %v324_v21 }
 0x3a6   :  { %618 = vrot.lane.b32.xlu0 %v2342_v16, %s2229_s13 }
 0x3ae   :  { %648 = vrot.lane.b32.xlu0 %v2348_v18, %s2228_s29 }
 0x3b6   :  { %646 = vrot.lane.b32.xlu0 %v2348_v18, %s2229_s13 }
 0x3c5   :  { %v258_v23 = vpop.f32.mrf.mxu3 }
 0x3c6   :  { %2011 = vmatmul.msk.f32.gmra.mxu2 %vm125_vm2, %v258_v23 }
 0x3cd   :  { %v366_v24 = vpop.f32.mrf.mxu3 }
 0x3ce   :  { %2008 = vmatmul.msk.f32.vlgmr.msra.gmra.mxu0 %vm125_vm2, %v366_v24 }
 0x3d5   :  { %v478_v25 = vpop.f32.mrf.mxu3 }
 0x3d6   :  { %v509_v26 = vmul.f32 0.35355338, %v478_v25 }
 0x3d8   :  { %v511_v28 = vadd.f32 %v509_v26, %v2369_v27 }
 0x3da   :  { %v513_v29 = vsel %vm125_vm2, %v511_v28, -inf }
 0x3db   :  { %514 = vmax.xlane.f32.xlu2 %v513_v29 }
 0x405   :  { %v326_v30 = vpop.xlane.xlu0 %325 }
 0x406   :  { %v328_v31 = vsub.f32 %v320_v20, %v326_v30 }
 0x408   :  { %v331_v32 = vmul.f32 1.442695, %v328_v31  ;;  %v2433_v45 = vpop.f32.mrf.mxu2 }
 0x40a   :  { %2121 = vpow2.f32 %v331_v32 }
 0x410   :  { %v2122_v33 = vpop.eup %2121 }
 0x411   :  { %v336_v34 = vsel %vm125_vm2, %v2122_v33, 0.0 }
 0x412   :  { %337 = vadd.xlane.f32.xlu1 %v336_v34 }
 0x418   :  { %v619_v35 = vpop.permute.xlu0 %618 }
 0x419   :  { %2021 = vmatmul.msk.f32.vlgmr.msra.gmra.mxu2 %vm125_vm2, %v619_v35 }
 0x420   :  { %v649_v54 = vpop.permute.xlu0 %648 }
 0x428   :  { %v647_v57 = vpop.permute.xlu0 %646 }
 0x449   :  { %v2436_v47 = vpop.f32.mrf.mxu2 }
 0x44e   :  { %v515_v37 = vpop.xlane.xlu2 %514 }
 0x44f   :  { %v519_v39 = vsub.f32 %v511_v28, %v515_v37 }
 0x451   :  { %v521_v40 = vmul.f32 1.442695, %v519_v39 }
 0x453   :  { %2123 = vpow2.f32 %v521_v40 }
 0x459   :  { %v2124_v41 = vpop.eup %2123 }
 0x45a   :  { %v525_v42 = vsel %vm125_vm2, %v2124_v41, 0.0 }
 0x45b   :  { %526 = vadd.xlane.f32.xlu1 %v525_v42 }
 0x474   :  { %535 = vrot.lane.b32.xlu1 %v2342_v16, %s2230_s16 }
 0x485   :  { %v338_v43 = vpop.xlane.xlu1 %337 }
 0x486   :  { %2125 = vrcp.f32 %v338_v43 }
 0x48c   :  { %v2126_v44 = vpop.eup %2125 }
 0x48d   :  { %v342_v46 = vmul.f32 %v2126_v44, %v2122_v33 }
 0x48f   :  { %2007 = vmatmul.msk.f32.vlgmr.msrb.gmra.mxu1 %vm125_vm2, %v342_v46 }
 0x497   :  { %2015 = vmatmul.msk.f32.vlgmr.msra.gmra.mxu1 %vm125_vm2, %v482_v36  ;;  %v90_v36 = vld [vmem:[%s2816_s6 + $0x18] sm:$0xff] }
 0x49c   :  { %v643_v48 = vpop.f32.mrf.mxu2 }
 0x49d   :  { %v674_v49 = vmul.f32 0.35355338, %v643_v48 }
 0x49f   :  { %v676_v50 = vadd.f32 %v674_v49, %v2369_v27 }
 0x4a1   :  { %v678_v51 = vsel %vm125_vm2, %v676_v50, -inf }
 0x4a2   :  { %679 = vmax.xlane.f32.xlu1 %v678_v51 }
 0x4ce   :  { %v527_v52 = vpop.xlane.xlu1 %526 }
 0x4cf   :  { %2127 = vrcp.f32 %v527_v52 }
 0x4d5   :  { %v2128_v53 = vpop.eup %2127 }
 0x4d6   :  { %v533_v55 = vmul.f32 %v2128_v53, %v2124_v41  ;;  %v418_v41 = vpop.f32.mrf.mxu0 }
 0x4d7   :  { %v448_v44 = vadd.f32 %v2433_v45, %v418_v41  ;;  %v890_v41 = vld [vmem:[%s2818_s8 + $0x28] sm:$0xff] }
 0x4e6   :  { %v536_v56 = vpop.permute.xlu1 %535 }
 0x4e7   :  { %556 = vmatpush.msra.mxu3 %v536_v56 }
 0x4e8   :  { %2016 = vmatmul.msk.f32.vlgmr.msra.gmra.mxu3 %vm125_vm2, %v533_v55 }
 0x4e9   :  { %2022 = vmatpush.xpose.msk.msrb.mxu3 %vm125_vm2, %v649_v54 }
 0x4ed   :  { %773 = vmatpush.msra.mxu3 %v90_v36  ;;  %v891_v36 = vld [vmem:[%s2818_s8 + $0x30] sm:$0xff] }
 0x4f0   :  { %2023 = vmatmul.msk.f32.vlgmr.msrb.gmra.mxu3 %vm125_vm2, %v647_v57 }
 0x50c   :  { %v392_v58 = vpop.f32.mrf.mxu1 }
 0x50d   :  { %2009 = vmatmul.msk.f32.gmra.mxu0 %vm125_vm2, %v392_v58 }
 0x514   :  { %v506_v59 = vpop.f32.mrf.mxu1 }
 0x515   :  { %v510_v60 = vmul.f32 0.35355338, %v506_v59  ;;  %v680_v61 = vpop.xlane.xlu1 %679 }
 0x516   :  { %v684_v62 = vsub.f32 %v676_v50, %v680_v61  ;;  %v785_v50 = vperm.slane %v2339_v13, 1  ;;  %v2232_v61 = vmov 32.0  }
 0x517   :  { %v512_v63 = vadd.f32 %v510_v60, %v2375_v38 }
 0x518   :  { %v686_v0 = vmul.f32 1.442695, %v684_v62 }
 0x519   :  { %v516_v1 = vsel %vm125_vm2, %v512_v63, -inf }
 0x51a   :  { %2129 = vpow2.f32 %v686_v0  ;;  %517 = vmax.xlane.f32.xlu0 %v516_v1 }
 0x520   :  { %v2130_v2 = vpop.eup %2129 }
 0x521   :  { %v690_v3 = vsel %vm125_vm2, %v2130_v2, 0.0 }
 0x522   :  { %691 = vadd.xlane.f32.xlu2 %v690_v3 }
 0x52e   :  { %700 = vrot.lane.b32.xlu0 %v2342_v16, %s2231_s17 }
 0x56b   :  { %v558_v5 = vpop.f32.mrf.mxu3 }
 0x56c   :  { %2018 = vmatmul.msk.f32.vlgmr.msrb.gmra.mxu0 %vm125_vm2, %v558_v5  ;;  %v851_v5 = vld [vmem:[%s2817_s7 + $0x10] sm:$0xff] }
 0x573   :  { %v671_v6 = vpop.f32.mrf.mxu3 }
 0x574   :  { %v675_v7 = vmul.f32 0.35355338, %v671_v6  ;;  %v850_v6 = vld [vmem:[%s2817_s7 + $0x8] sm:$0xff] }
 0x576   :  { %v677_v8 = vadd.f32 %v675_v7, %v2375_v38 }
 0x578   :  { %v681_v9 = vsel %vm125_vm2, %v677_v8, -inf }
 0x579   :  { %682 = vmax.xlane.f32.xlu1 %v681_v9 }
 0x58a   :  { %v421_v42 = vpop.f32.mrf.mxu0 }
 0x58b   :  { %v451_v57 = vadd.f32 %v2436_v47, %v421_v42 }
 0x58d   :  { %v518_v11 = vpop.xlane.xlu0 %517 }
 0x58e   :  { %v520_v14 = vsub.f32 %v512_v63, %v518_v11 }
 0x590   :  { %v523_v15 = vmul.f32 1.442695, %v520_v14 }
 0x592   :  { %2131 = vpow2.f32 %v523_v15  ;;  %726 = vrot.lane.b32.xlu1 %v2348_v18, %s2231_s17 }
 0x595   :  { %v692_v25 = vpop.xlane.xlu2 %691 }
 0x598   :  { %v2132_v16 = vpop.eup %2131 }
 0x599   :  { %v528_v17 = vsel %vm125_vm2, %v2132_v16, 0.0 }
 0x59a   :  { %529 = vadd.xlane.f32.xlu2 %v528_v17 }
 0x5a0   :  { %v701_v31 = vpop.permute.xlu0 %700 }
 0x5b2   :  { %561 = vrot.lane.b32.xlu2 %v2348_v18, %s2230_s16 }
 0x5e9   :  { %v610_v43 = vpop.f32.mrf.mxu0 }
 0x5ea   :  { %v616_v46 = vadd.f32 %v610_v43, %v448_v44  ;;  %v889_v43 = vld [vmem:[%s2818_s8 + $0x20] sm:$0xff] }
 0x5ec   :  { %v683_v19 = vpop.xlane.xlu1 %682 }
 0x5ed   :  { %v685_v20 = vsub.f32 %v677_v8, %v683_v19  ;;  %v849_v8 = vld [vmem:[%s2817_s7] sm:$0xff] }
 0x5ef   :  { %v688_v21 = vmul.f32 1.442695, %v685_v20 }
 0x5f1   :  { %2133 = vpow2.f32 %v688_v21 }
 0x5f7   :  { %v2134_v22 = vpop.eup %2133 }
 0x5f8   :  { %v693_v23 = vsel %vm125_vm2, %v2134_v22, 0.0 }
 0x5f9   :  { %694 = vadd.xlane.f32.xlu2 %v693_v23 }
 0x604   :  { %v727_v24 = vpop.permute.xlu1 %726 }
 0x605   :  { %747 = vmatpush.msrb.mxu2 %v727_v24 }
 0x60d   :  { %v530_v26 = vpop.xlane.xlu2 %529 }
 0x60e   :  { %2135 = vrcp.f32 %v530_v26 }
 0x60f   :  { %2137 = vrcp.f32 %v692_v25 }
 0x614   :  { %v2136_v28 = vpop.eup %2135 }
 0x615   :  { %v534_v29 = vmul.f32 %v2136_v28, %v2132_v16  ;;  %v562_v30 = vpop.permute.xlu2 %561  ;;  %v2138_v18 = vpop.eup %2137  ;;  %v843_v28 = vperm.slane %v2339_v13, 2 }
 0x616   :  { %582 = vmatpush.msrb.mxu1 %v562_v30  ;;  %v698_v32 = vmul.f32 %v2138_v18, %v2130_v2 }
 0x617   :  { %2017 = vmatmul.msk.f32.vlgmr.msrb.gmra.mxu1 %vm125_vm2, %v534_v29 }
 0x618   :  { %721 = vmatpush.msra.mxu1 %v701_v31  ;;  %v846_v31 = vperm.slane %v2339_v13, 3 }
 0x61f   :  { %2024 = vmatmul.msk.f32.vlgmr.msra.gmra.mxu1 %vm125_vm2, %v698_v32 }
 0x66c   :  { %v695_v33 = vpop.xlane.xlu2 %694 }
 0x66d   :  { %2139 = vrcp.f32 %v695_v33 }
 0x66e   :  { %2141 = vrcp.f32 %v2232_v61  ;;  %v853_v61 = vperm.slane %v2339_v13, 4 }
 0x673   :  { %v2140_v34 = vpop.eup %2139 }
 0x674   :  { %v699_v35 = vmul.f32 %v2140_v34, %v2134_v22  ;;  %v2142_v63 = vpop.eup %2141 }
 0x675   :  { %v795_v1 = vmul.f32 32.0, %v2142_v63  ;;  %vm799_vm4 = vweird.f32 %v2142_v63 }
 0x676   :  { %2025 = vmatmul.msk.f32.vlgmr.msrb.gmra.mxu2 %vm125_vm2, %v699_v35  ;;  %v892_v35 = vld [vmem:[%s2818_s8 + $0x38] sm:$0xff] }
 0x677   :  { %v796_v2 = vsub.f32 1.0, %v795_v1  ;;  %909 = vmatpush.msra.mxu0 %v892_v35 }
 0x679   :  { %v797_v3 = vmul.f32 %v2142_v63, %v796_v2  ;;  %910 = vmatpush.msra.mxu0 %v891_v36  ;;  %v893_v2 = vperm.slane %v2339_v13, 5 }
 0x67b   :  { %v798_v4 = vadd.f32 %v2142_v63, %v797_v3  ;;  %911 = vmatpush.msra.mxu0 %v890_v41  ;;  %v977_v41 = vperm.slane %v2339_v13, 7 }
 0x67d   :  { %v2494_v7 = vsel %vm799_vm4, %v2142_v63, %v798_v4  ;;  %912 = vmatpush.msra.mxu0 %v889_v43 }
 0x694   :  { %v584_v37 = vpop.f32.mrf.mxu1 }
 0x695   :  { %2019 = vmatmul.msk.f32.gmra.mxu0 %vm125_vm2, %v584_v37 }
 0x69c   :  { %v723_v39 = vpop.f32.mrf.mxu1 }
 0x69d   :  { %2026 = vmatmul.msk.f32.vlgmr.msra.gmra.mxu3 %vm125_vm2, %v723_v39 }
 0x6f9   :  { %v749_v40 = vpop.f32.mrf.mxu2 }
 0x6fa   :  { %2027 = vmatmul.msk.f32.gmra.mxu3 %vm125_vm2, %v749_v40 }
 0x712   :  { %v613_v56 = vpop.f32.mrf.mxu0 }
 0x713   :  { %v617_v58 = vadd.f32 %v613_v56, %v451_v57  ;;  %v887_v57 = vld [vmem:[%s2818_s8 + $0x10] sm:$0xff] }
 0x720   :  { %v775_v48 = vpop.f32.mrf.mxu3 }
 0x721   :  { %v781_v49 = vadd.f32 %v775_v48, %v616_v46  ;;  %v888_v46 = vld [vmem:[%s2818_s8 + $0x18] sm:$0xff] }
 0x722   :  { %913 = vmatpush.msra.mxu0 %v888_v46 }
 0x723   :  { %v783_v51 = vadd.f32 %v781_v49, %v2328_v10 }
 0x724   :  { %914 = vmatpush.msra.mxu0 %v887_v57 }
 0x725   :  { %v786_v52 = vadd.f32 %v785_v50, %v783_v51 }
 0x727   :  { %v788_v53 = vsel %vm92_vm1, %v786_v52, 0.0  ;;  %v803_v54 = vmul.f32 %v786_v52, %v786_v52 }
 0x728   :  { %789 = vadd.xlane.f32.xlu0 %v788_v53 }
 0x729   :  { %v805_v55 = vsel %vm92_vm1, %v803_v54, 0.0 }
 0x72a   :  { %806 = vadd.xlane.f32.xlu1 %v805_v55 }
 0x77d   :  { %v778_v45 = vpop.f32.mrf.mxu3 }
 0x77e   :  { %v782_v59 = vadd.f32 %v778_v45, %v617_v58  ;;  %v886_v45 = vld [vmem:[%s2818_s8 + $0x8] sm:$0xff] }
 0x77f   :  { %915 = vmatpush.msra.mxu0 %v886_v45 }
 0x780   :  { %v784_v60 = vadd.f32 %v782_v59, %v2332_v12  ;;  %v852_v12 = vld [vmem:[%s2817_s7 + $0x18] sm:$0xff]  ;;  %v885_v59 = vld [vmem:[%s2818_s8] sm:$0xff] }
 0x781   :  { %872 = vmatpush.msrb.mxu1 %v852_v12  ;;  %916 = vmatpush.msra.mxu0 %v885_v59 }
 0x782   :  { %v2478_v62 = vadd.f32 %v785_v50, %v784_v60 }
 0x783   :  { %873 = vmatpush.msrb.mxu1 %v851_v5 }
 0x784   :  { %v791_v10 = vsel %vm92_vm1, %v2478_v62, 0.0  ;;  %v804_v0 = vmul.f32 %v2478_v62, %v2478_v62 }
 0x785   :  { %792 = vadd.xlane.f32.xlu2 %v791_v10  ;;  %874 = vmatpush.msrb.mxu1 %v850_v6 }
 0x786   :  { %v808_v47 = vsel %vm92_vm1, %v804_v0, 0.0 }
 0x787   :  { %875 = vmatpush.msrb.mxu1 %v849_v8 }
 0x78d   :  { %809 = vadd.xlane.f32.xlu2 %v808_v47 }
 0x79b   :  { %v790_v9 = vpop.xlane.xlu0 %789 }
 0x79c   :  { %v801_v11 = vmul.f32 %v2494_v7, %v790_v9 }
 0x79d   :  { %v807_v14 = vpop.xlane.xlu1 %806 }
 0x79e   :  { %v813_v15 = vmul.f32 %v801_v11, %v801_v11  ;;  %v811_v16 = vmul.f32 %v807_v14, %v2494_v7  ;;  %v817_v26 = vsub.f32 %v786_v52, %v801_v11 }
 0x7a0   :  { %v815_v17 = vsub.f32 %v811_v16, %v813_v15 }
 0x7a2   :  { %v819_v19 = vadd.f32 1e-05, %v815_v17 }
 0x7a4   :  { %2143 = vrsqrt.f32 %v819_v19  ;;  %vm827_vm6 = vweird.f32 %v819_v19 }
 0x7aa   :  { %v2144_v20 = vpop.eup %2143 }
 0x7ab   :  { %v822_v21 = vmul.f32 %v2144_v20, %v819_v19  ;;  %vm828_vm5 = vweird.f32 %v2144_v20  ;;  %v2036_v19 = vld [vmem:[%s2815_s5 + $0x38] sm:$0xff] }
 0x7ac   :  { %vm829_vm7 = vmor %vm827_vm6, %vm828_vm5  ;;  %1011 = vmatpush.msra.mxu2 %v2036_v19 }
 0x7ad   :  { %v823_v22 = vmul.f32 %v2144_v20, %v822_v21  ;;  %v2034_v21 = vld [vmem:[%s2815_s5 + $0x28] sm:$0xff] }
 0x7af   :  { %v824_v23 = vmul.f32 0.5, %v823_v22  ;;  %v2033_v22 = vld [vmem:[%s2815_s5 + $0x20] sm:$0xff] }
 0x7b1   :  { %v825_v24 = vsub.f32 1.5, %v824_v23 }
 0x7b3   :  { %v826_v25 = vmul.f32 %v2144_v20, %v825_v24 }
 0x7b5   :  { %v830_v29 = vsel %vm829_vm7, %v2144_v20, %v826_v25  ;;  %v2035_v20 = vld [vmem:[%s2815_s5 + $0x30] sm:$0xff] }
 0x7b6   :  { %v841_v30 = vmul.f32 %v830_v29, %v817_v26  ;;  %1012 = vmatpush.msra.mxu2 %v2035_v20 }
 0x7b8   :  { %v844_v18 = vmul.f32 %v843_v28, %v841_v30  ;;  %1013 = vmatpush.msra.mxu2 %v2034_v21 }
 0x7ba   :  { %v847_v32 = vadd.f32 %v846_v31, %v844_v18  ;;  %1014 = vmatpush.msra.mxu2 %v2033_v22 }
 0x7bc   :  { %2028 = vmatmul.msk.f32.vlgmr.msrb.gmra.mxu1 %vm92_vm1, %v847_v32 }
 0x7f8   :  { %v793_v33 = vpop.xlane.xlu2 %792 }
 0x7f9   :  { %v802_v34 = vmul.f32 %v2494_v7, %v793_v33 }
 0x7fb   :  { %v814_v39 = vmul.f32 %v802_v34, %v802_v34  ;;  %v818_v54 = vsub.f32 %v2478_v62, %v802_v34 }
 0x800   :  { %v810_v37 = vpop.xlane.xlu2 %809 }
 0x801   :  { %v812_v40 = vmul.f32 %v810_v37, %v2494_v7  ;;  %v974_v37 = vperm.slane %v2339_v13, 6 }
 0x803   :  { %v816_v42 = vsub.f32 %v812_v40, %v814_v39 }
 0x805   :  { %v820_v44 = vadd.f32 1e-05, %v816_v42 }
 0x807   :  { %2145 = vrsqrt.f32 %v820_v44  ;;  %vm837_vm9 = vweird.f32 %v820_v44 }
 0x80d   :  { %v2146_v48 = vpop.eup %2145 }
 0x80e   :  { %v832_v49 = vmul.f32 %v2146_v48, %v820_v44  ;;  %vm838_vm8 = vweird.f32 %v2146_v48 }
 0x80f   :  { %vm839_vm10 = vmor %vm837_vm9, %vm838_vm8 }
 0x810   :  { %v833_v50 = vmul.f32 %v2146_v48, %v832_v49 }
 0x812   :  { %v834_v51 = vmul.f32 0.5, %v833_v50 }
 0x814   :  { %v835_v52 = vsub.f32 1.5, %v834_v51 }
 0x816   :  { %v836_v53 = vmul.f32 %v2146_v48, %v835_v52 }
 0x818   :  { %v840_v55 = vsel %vm839_vm10, %v2146_v48, %v836_v53  ;;  %vm1867_vm10 = vcmask 58368  }
 0x819   :  { %v842_v56 = vmul.f32 %v840_v55, %v818_v54 }
 0x81b   :  { %v845_v58 = vmul.f32 %v843_v28, %v842_v56 }
 0x81d   :  { %v848_v60 = vadd.f32 %v846_v31, %v845_v58 }
 0x81f   :  { %2029 = vmatmul.msk.f32.gmra.mxu1 %vm92_vm1, %v848_v60 }
 0x839   :  { %v877_v62 = vpop.f32.mrf.mxu1 }
 0x83a   :  { %v878_v10 = vadd.f32 %v877_v62, %v853_v61  ;;  %v2569_v62 = vld [vmem:[%s2814_s4 + $0x8] sm:$0xff] }
 0x83c   :  { %v883_v63 = vmax.f32 %v878_v10, 0.0  ;;  %v992_v10 = vperm.slane %v2569_v62, 0 }
 0x83e   :  { %2030 = vmatmul.msk.f32.vlgmr.msra.gmra.mxu0 %vm894_vm11, %v883_v63 }
 0x89c   :  { %v880_v0 = vpop.f32.mrf.mxu1 }
 0x89d   :  { %v881_v1 = vadd.f32 %v880_v0, %v853_v61 }
 0x89f   :  { %v884_v47 = vmax.f32 %v881_v1, 0.0 }
 0x8a1   :  { %2031 = vmatmul.msk.f32.gmra.mxu0 %vm894_vm11, %v884_v47 }
 0x8bb   :  { %v918_v3 = vpop.f32.mrf.mxu0 }
 0x8bc   :  { %v919_v4 = vadd.f32 %v918_v3, %v893_v2 }
 0x8be   :  { %v924_v12 = vadd.f32 %v919_v4, %v847_v32 }
 0x8c0   :  { %v926_v5 = vsel %vm92_vm1, %v924_v12, 0.0  ;;  %v934_v6 = vmul.f32 %v924_v12, %v924_v12 }
 0x8c1   :  { %927 = vadd.xlane.f32.xlu2 %v926_v5 }
 0x8c2   :  { %v936_v8 = vsel %vm92_vm1, %v934_v6, 0.0 }
 0x8c3   :  { %937 = vadd.xlane.f32.xlu0 %v936_v8 }
 0x91e   :  { %v921_v9 = vpop.f32.mrf.mxu0 }
 0x91f   :  { %v922_v11 = vadd.f32 %v921_v9, %v893_v2 }
 0x921   :  { %v925_v14 = vadd.f32 %v922_v11, %v848_v60 }
 0x923   :  { %v929_v15 = vsel %vm92_vm1, %v925_v14, 0.0  ;;  %v935_v16 = vmul.f32 %v925_v14, %v925_v14 }
 0x924   :  { %930 = vadd.xlane.f32.xlu2 %v929_v15 }
 0x925   :  { %v939_v17 = vsel %vm92_vm1, %v935_v16, 0.0 }
 0x926   :  { %940 = vadd.xlane.f32.xlu0 %v939_v17 }
 0x934   :  { %v928_v23 = vpop.xlane.xlu2 %927 }
 0x935   :  { %v932_v24 = vmul.f32 %v928_v23, %v2494_v7 }
 0x936   :  { %v938_v25 = vpop.xlane.xlu0 %937 }
 0x937   :  { %v944_v26 = vmul.f32 %v932_v24, %v932_v24  ;;  %v942_v28 = vmul.f32 %v938_v25, %v2494_v7  ;;  %v948_v36 = vsub.f32 %v924_v12, %v932_v24 }
 0x939   :  { %v946_v29 = vsub.f32 %v942_v28, %v944_v26 }
 0x93b   :  { %v950_v30 = vadd.f32 1e-05, %v946_v29 }
 0x93d   :  { %2147 = vrsqrt.f32 %v950_v30  ;;  %vm958_vm13 = vweird.f32 %v950_v30 }
 0x943   :  { %v2148_v31 = vpop.eup %2147 }
 0x944   :  { %v953_v18 = vmul.f32 %v2148_v31, %v950_v30  ;;  %vm959_vm12 = vweird.f32 %v2148_v31 }
 0x945   :  { %vm960_vm14 = vmor %vm958_vm13, %vm959_vm12 }
 0x946   :  { %v954_v32 = vmul.f32 %v2148_v31, %v953_v18 }
 0x948   :  { %v955_v33 = vmul.f32 0.5, %v954_v32 }
 0x94a   :  { %v956_v34 = vsub.f32 1.5, %v955_v33 }
 0x94c   :  { %v957_v35 = vmul.f32 %v2148_v31, %v956_v34 }
 0x94e   :  { %v961_v39 = vsel %vm960_vm14, %v2148_v31, %v957_v35 }
 0x94f   :  { %v972_v40 = vmul.f32 %v961_v39, %v948_v36 }
 0x951   :  { %v975_v42 = vmul.f32 %v974_v37, %v972_v40 }
 0x953   :  { %v2556_v43 = vadd.f32 %v977_v41, %v975_v42 }
 0x955   :  { %2041 = vmatmul.msk.f32.vlgmr.msra.gmra.mxu2 %vm92_vm1, %v2556_v43 }
 0x997   :  { %v931_v44 = vpop.xlane.xlu2 %930 }
 0x998   :  { %v933_v46 = vmul.f32 %v931_v44, %v2494_v7 }
 0x999   :  { %v941_v48 = vpop.xlane.xlu0 %940 }
 0x99a   :  { %v945_v49 = vmul.f32 %v933_v46, %v933_v46  ;;  %v943_v50 = vmul.f32 %v941_v48, %v2494_v7  ;;  %v949_v58 = vsub.f32 %v925_v14, %v933_v46 }
 0x99c   :  { %v947_v51 = vsub.f32 %v943_v50, %v945_v49 }
 0x99e   :  { %v951_v52 = vadd.f32 1e-05, %v947_v51 }
 0x9a0   :  { %2149 = vrsqrt.f32 %v951_v52  ;;  %vm968_vm3 = vweird.f32 %v951_v52 }
 0x9a6   :  { %v2150_v53 = vpop.eup %2149 }
 0x9a7   :  { %v963_v54 = vmul.f32 %v2150_v53, %v951_v52  ;;  %vm969_vm15 = vweird.f32 %v2150_v53 }
 0x9a8   :  { %vm970_vm4 = vmor %vm968_vm3, %vm969_vm15 }
 0x9a9   :  { %v964_v55 = vmul.f32 %v2150_v53, %v963_v54 }
 0x9ab   :  { %v965_v13 = vmul.f32 0.5, %v964_v55 }
 0x9ad   :  { %v966_v56 = vsub.f32 1.5, %v965_v13 }
 0x9af   :  { %v967_v57 = vmul.f32 %v2150_v53, %v966_v56 }
 0x9b1   :  { %v971_v45 = vsel %vm970_vm4, %v2150_v53, %v967_v57 }
 0x9b2   :  { %v973_v59 = vmul.f32 %v971_v45, %v949_v58 }
 0x9b4   :  { %v976_v60 = vmul.f32 %v974_v37, %v973_v59 }
 0x9b6   :  { %v2562_v61 = vadd.f32 %v977_v41, %v976_v60 }
 0x9b8   :  { %2042 = vmatmul.msk.f32.gmra.mxu2 %vm92_vm1, %v2562_v61 }
 0x9d8   :  { %v1016_v63 = vpop.f32.mrf.mxu2 }
 0x9d9   :  { %v2572_v0 = vadd.f32 %v1016_v63, %v992_v10  ;;  %v2038_v63 = vld [vmem:[%s2816_s6 + $0x28] sm:$0xff] }
 0x9db   :  { %1154 = vrot.lane.b32.xlu0 %v2572_v0, %s2222_s22  ;;  %1156 = vrot.lane.b32.xlu2 %v2572_v0, %s2220_s2 }
 0x9dc   :  { %1023 = vrot.lane.b32.xlu1 %v2572_v0, %s2221_s21 }
 0xa35   :  { %v1157_v3 = vpop.permute.xlu2 %1156 }
 0xa3b   :  { %v1019_v1 = vpop.f32.mrf.mxu2 }
 0xa3c   :  { %v2580_v47 = vadd.f32 %v1019_v1, %v992_v10  ;;  %v2037_v10 = vld [vmem:[%s2816_s6 + $0x20] sm:$0xff] }
 0xa3e   :  { %1050 = vrot.lane.b32.xlu0 %v2580_v47, %s2221_s21 }
 0xa46   :  { %1184 = vrot.lane.b32.xlu0 %v2580_v47, %s2220_s2 }
 0xa4d   :  { %v1155_v4 = vpop.permute.xlu0 %1154 }
 0xa4e   :  { %v1024_v2 = vpop.permute.xlu1 %1023  ;;  %1182 = vrot.lane.b32.xlu0 %v2580_v47, %s2222_s22 }
 0xa4f   :  { %2043 = vmatpush.xpose.msk.msrb.mxu3 %vm125_vm2, %v1024_v2 }
 0xa52   :  { %2044 = vmatmul.msk.f32.vlgmr.msrb.gmra.mxu3 %vm125_vm2, %v2572_v0 }
 0xa53   :  { %2049 = vmatpush.xpose.msk.msra.mxu3 %vm125_vm2, %v1157_v3 }
 0xa57   :  { %1309 = vmatpush.msrb.mxu3 %v2038_v63 }
 0xa5a   :  { %2050 = vmatmul.msk.f32.vlgmr.msra.gmra.mxu3 %vm125_vm2, %v1155_v4 }
 0xab0   :  { %v1051_v12 = vpop.permute.xlu0 %1050 }
 0xab1   :  { %2045 = vmatpush.xpose.msk.msra.mxu1 %vm125_vm2, %v1051_v12 }
 0xab4   :  { %2046 = vmatmul.msk.f32.vlgmr.msra.gmra.mxu1 %vm125_vm2, %v2580_v47 }
 0xab8   :  { %v1185_v5 = vpop.permute.xlu0 %1184 }
 0xab9   :  { %2051 = vmatpush.xpose.msk.msrb.mxu1 %vm125_vm2, %v1185_v5 }
 0xabd   :  { %1338 = vmatpush.msra.mxu1 %v2037_v10 }
 0xac0   :  { %v1183_v6 = vpop.permute.xlu0 %1182 }
 0xac1   :  { %2052 = vmatmul.msk.f32.vlgmr.msrb.gmra.mxu1 %vm125_vm2, %v1183_v6 }
 0xad5   :  { %v1046_v8 = vpop.f32.mrf.mxu3 }
 0xad6   :  { %v1076_v9 = vmul.f32 0.35355338, %v1046_v8 }
 0xad8   :  { %v1078_v11 = vadd.f32 %v1076_v9, %v2369_v27 }
 0xada   :  { %v1080_v14 = vsel %vm125_vm2, %v1078_v11, -inf }
 0xadb   :  { %1081 = vmax.xlane.f32.xlu2 %v1080_v14 }
 0xadd   :  { %v1179_v15 = vpop.f32.mrf.mxu3 }
 0xade   :  { %v1210_v16 = vmul.f32 0.35355338, %v1179_v15 }
 0xae0   :  { %v1212_v17 = vadd.f32 %v1210_v16, %v2369_v27 }
 0xae2   :  { %v1214_v19 = vsel %vm125_vm2, %v1212_v17, -inf }
 0xae3   :  { %1215 = vmax.xlane.f32.xlu1 %v1214_v19 }
 0xafc   :  { %1102 = vrot.lane.b32.xlu1 %v2572_v0, %s2223_s23 }
 0xb04   :  { %1346 = vrot.lane.b32.xlu1 %v2572_v0, %s2225_s26 }
 0xb31   :  { %v1073_v18 = vpop.f32.mrf.mxu1 }
 0xb32   :  { %v1077_v34 = vmul.f32 0.35355338, %v1073_v18 }
 0xb34   :  { %v1079_v36 = vadd.f32 %v1077_v34, %v2375_v38 }
 0xb36   :  { %v1083_v39 = vsel %vm125_vm2, %v1079_v36, -inf }
 0xb3e   :  { %v1207_v32 = vpop.f32.mrf.mxu1 }
 0xb3f   :  { %v1211_v33 = vmul.f32 0.35355338, %v1207_v32 }
 0xb41   :  { %v1213_v35 = vadd.f32 %v1211_v33, %v2375_v38 }
 0xb43   :  { %v1217_v37 = vsel %vm125_vm2, %v1213_v35, -inf }
 0xb4e   :  { %v1082_v20 = vpop.xlane.xlu2 %1081 }
 0xb4f   :  { %v1086_v21 = vsub.f32 %v1078_v11, %v1082_v20 }
 0xb51   :  { %v1088_v22 = vmul.f32 1.442695, %v1086_v21 }
 0xb53   :  { %2151 = vpow2.f32 %v1088_v22 }
 0xb56   :  { %v1216_v23 = vpop.xlane.xlu1 %1215 }
 0xb57   :  { %v1220_v24 = vsub.f32 %v1212_v17, %v1216_v23 }
 0xb59   :  { %v2152_v25 = vpop.eup %2151  ;;  %v1222_v26 = vmul.f32 1.442695, %v1220_v24 }
 0xb5a   :  { %v1092_v28 = vsel %vm125_vm2, %v2152_v25, 0.0 }
 0xb5b   :  { %2153 = vpow2.f32 %v1222_v26  ;;  %1093 = vadd.xlane.f32.xlu0 %v1092_v28 }
 0xb61   :  { %v2154_v29 = vpop.eup %2153 }
 0xb62   :  { %v1226_v30 = vsel %vm125_vm2, %v2154_v29, 0.0 }
 0xb63   :  { %1227 = vadd.xlane.f32.xlu2 %v1226_v30 }
 0xb6e   :  { %v1103_v31 = vpop.permute.xlu1 %1102 }
 0xb6f   :  { %1123 = vmatpush.msrb.mxu0 %v1103_v31  ;;  %1348 = vrot.lane.b32.xlu0 %v2572_v0, %s2227_s28 }
 0xb76   :  { %v1347_v51 = vpop.permute.xlu1 %1346 }
 0xb77   :  { %1128 = vrot.lane.b32.xlu0 %v2580_v47, %s2223_s23 }
 0xb7b   :  { %1236 = vrot.lane.b32.xlu2 %v2572_v0, %s2226_s27 }
 0xba1   :  { %1218 = vmax.xlane.f32.xlu0 %v1217_v37 }
 0xba4   :  { %1084 = vmax.xlane.f32.xlu2 %v1083_v39 }
 0xbb5   :  { %1374 = vrot.lane.b32.xlu0 %v2580_v47, %s2225_s26 }
 0xbbd   :  { %1511 = vrot.lane.b32.xlu0 %v2572_v0, %s2229_s13 }
 0xbc5   :  { %1541 = vrot.lane.b32.xlu0 %v2580_v47, %s2228_s29 }
 0xbce   :  { %v1094_v40 = vpop.xlane.xlu0 %1093 }
 0xbcf   :  { %2155 = vrcp.f32 %v1094_v40 }
 0xbd5   :  { %v2156_v41 = vpop.eup %2155 }
 0xbd6   :  { %v1100_v42 = vmul.f32 %v2156_v41, %v2152_v25  ;;  %v1228_v44 = vpop.xlane.xlu2 %1227 }
 0xbd7   :  { %2157 = vrcp.f32 %v1228_v44 }
 0xbd8   :  { %2047 = vmatmul.msk.f32.vlgmr.msrb.gmra.mxu0 %vm125_vm2, %v1100_v42 }
 0xbdd   :  { %v2158_v46 = vpop.eup %2157 }
 0xbde   :  { %v1234_v48 = vmul.f32 %v2158_v46, %v2154_v29  ;;  %v1237_v49 = vpop.permute.xlu2 %1236 }
 0xbdf   :  { %1257 = vmatpush.msra.mxu0 %v1237_v49  ;;  %v2039_v49 = vld [vmem:[%s2816_s6 + $0x30] sm:$0xff] }
 0xbe0   :  { %2053 = vmatmul.msk.f32.vlgmr.msra.gmra.mxu0 %vm125_vm2, %v1234_v48  ;;  %1501 = vmatpush.msra.mxu3 %v2039_v49  ;;  %v2076_v49 = vld [vmem:[%s2817_s7 + $0x28] sm:$0xff] }
 0xbe1   :  { %v1349_v50 = vpop.permute.xlu0 %1348 }
 0xbe2   :  { %2059 = vmatpush.xpose.msk.msrb.mxu0 %vm125_vm2, %v1349_v50 }
 0xbe8   :  { %2060 = vmatmul.msk.f32.vlgmr.msrb.gmra.mxu0 %vm125_vm2, %v1347_v51 }
 0xbe9   :  { %v1129_v52 = vpop.permute.xlu0 %1128 }
 0xbea   :  { %1149 = vmatpush.msrb.mxu2 %v1129_v52 }
 0xc14   :  { %v1219_v53 = vpop.xlane.xlu0 %1218 }
 0xc15   :  { %v1221_v13 = vsub.f32 %v1213_v35, %v1219_v53 }
 0xc17   :  { %v1085_v54 = vpop.xlane.xlu2 %1084  ;;  %v1224_v57 = vmul.f32 1.442695, %v1221_v13 }
 0xc18   :  { %v1087_v55 = vsub.f32 %v1079_v36, %v1085_v54 }
 0xc1a   :  { %v1090_v56 = vmul.f32 1.442695, %v1087_v55 }
 0xc1c   :  { %2159 = vpow2.f32 %v1090_v56 }
 0xc1d   :  { %2161 = vpow2.f32 %v1224_v57 }
 0xc22   :  { %v2160_v58 = vpop.eup %2159 }
 0xc23   :  { %v1095_v45 = vsel %vm125_vm2, %v2160_v58, 0.0  ;;  %v2162_v59 = vpop.eup %2161 }
 0xc24   :  { %1096 = vadd.xlane.f32.xlu1 %v1095_v45  ;;  %v1229_v60 = vsel %vm125_vm2, %v2162_v59, 0.0 }
 0xc27   :  { %v1375_v14 = vpop.permute.xlu0 %1374 }
 0xc2c   :  { %1230 = vadd.xlane.f32.xlu1 %v1229_v60 }
 0xc2f   :  { %v1512_v16 = vpop.permute.xlu0 %1511 }
 0xc37   :  { %v1542_v20 = vpop.permute.xlu0 %1541 }
 0xc45   :  { %1376 = vrot.lane.b32.xlu1 %v2580_v47, %s2227_s28 }
 0xc4d   :  { %1513 = vrot.lane.b32.xlu1 %v2572_v0, %s2228_s29 }
 0xc55   :  { %v1125_v1 = vpop.f32.mrf.mxu0  ;;  %1428 = vrot.lane.b32.xlu1 %v2572_v0, %s2230_s16 }
 0xc56   :  { %2057 = vmatmul.msk.f32.vlgmr.msra.gmra.mxu1 %vm125_vm2, %v1125_v1 }
 0xc5d   :  { %v1259_v2 = vpop.f32.mrf.mxu0  ;;  %1539 = vrot.lane.b32.xlu1 %v2580_v47, %s2229_s13 }
 0xc5e   :  { %2055 = vmatmul.msk.f32.vlgmr.msrb.gmra.mxu3 %vm125_vm2, %v1259_v2 }
 0xc65   :  { %v1371_v3 = vpop.f32.mrf.mxu0 }
 0xc66   :  { %v1402_v4 = vmul.f32 0.35355338, %v1371_v3 }
 0xc68   :  { %v1404_v12 = vadd.f32 %v1402_v4, %v2369_v27 }
 0xc6a   :  { %v1406_v5 = vsel %vm125_vm2, %v1404_v12, -inf }
 0xc6b   :  { %1407 = vmax.xlane.f32.xlu2 %v1406_v5 }
 0xc83   :  { %1262 = vrot.lane.b32.xlu2 %v2580_v47, %s2226_s27 }
 0xc97   :  { %v1097_v6 = vpop.xlane.xlu1 %1096 }
 0xc98   :  { %2163 = vrcp.f32 %v1097_v6 }
 0xc9e   :  { %v2164_v8 = vpop.eup %2163 }
 0xc9f   :  { %v1101_v9 = vmul.f32 %v2164_v8, %v2160_v58  ;;  %v1231_v11 = vpop.xlane.xlu1 %1230 }
 0xca0   :  { %2165 = vrcp.f32 %v1231_v11 }
 0xca1   :  { %2048 = vmatmul.msk.f32.vlgmr.msrb.gmra.mxu2 %vm125_vm2, %v1101_v9 }
 0xca6   :  { %v2166_v24 = vpop.eup %2165 }
 0xca7   :  { %v1235_v25 = vmul.f32 %v2166_v24, %v2162_v59 }
 0xcb7   :  { %v1377_v15 = vpop.permute.xlu1 %1376 }
 0xcbf   :  { %v1514_v17 = vpop.permute.xlu1 %1513 }
 0xcc0   :  { %2067 = vmatpush.xpose.msk.msrb.mxu1 %vm125_vm2, %v1514_v17 }
 0xcc7   :  { %v1429_v19 = vpop.permute.xlu1 %1428 }
 0xcc8   :  { %1449 = vmatpush.msra.mxu0 %v1429_v19 }
 0xcca   :  { %2069 = vmatpush.xpose.msk.msrb.mxu0 %vm125_vm2, %v1542_v20 }
 0xccf   :  { %v1540_v34 = vpop.permute.xlu1 %1539 }
 0xcd3   :  { %v2666_v40 = vpop.f32.mrf.mxu1 }
 0xcde   :  { %v1408_v21 = vpop.xlane.xlu2 %1407 }
 0xcdf   :  { %v1412_v22 = vsub.f32 %v1404_v12, %v1408_v21 }
 0xce1   :  { %v1414_v23 = vmul.f32 1.442695, %v1412_v22  ;;  %v1311_v22 = vpop.f32.mrf.mxu3 }
 0xce3   :  { %2167 = vpow2.f32 %v1414_v23 }
 0xce6   :  { %v1263_v26 = vpop.permute.xlu2 %1262 }
 0xce7   :  { %1283 = vmatpush.msra.mxu2 %v1263_v26 }
 0xce8   :  { %2054 = vmatmul.msk.f32.vlgmr.msra.gmra.mxu2 %vm125_vm2, %v1235_v25  ;;  %v1341_v25 = vadd.f32 %v2666_v40, %v1311_v22 }
 0xce9   :  { %v2168_v28 = vpop.eup %2167  ;;  %2061 = vmatpush.xpose.msk.msrb.mxu2 %vm125_vm2, %v1377_v15 }
 0xcea   :  { %v1418_v29 = vsel %vm125_vm2, %v2168_v28, 0.0 }
 0xceb   :  { %1419 = vadd.xlane.f32.xlu2 %v1418_v29 }
 0xcf0   :  { %2062 = vmatmul.msk.f32.vlgmr.msrb.gmra.mxu2 %vm125_vm2, %v1375_v14 }
 0xd24   :  { %v1151_v30 = vpop.f32.mrf.mxu2 }
 0xd25   :  { %2058 = vmatmul.msk.f32.gmra.mxu1 %vm125_vm2, %v1151_v30  ;;  %v1678_v30 = vperm.slane %v2569_v62, 1 }
 0xd2d   :  { %2068 = vmatmul.msk.f32.vlgmr.msrb.gmra.mxu1 %vm125_vm2, %v1512_v16 }
 0xd5e   :  { %v1420_v31 = vpop.xlane.xlu2 %1419 }
 0xd5f   :  { %2169 = vrcp.f32 %v1420_v31 }
 0xd65   :  { %v2170_v18 = vpop.eup %2169 }
 0xd66   :  { %v1426_v32 = vmul.f32 %v2170_v18, %v2168_v28 }
 0xd68   :  { %2063 = vmatmul.msk.f32.vlgmr.msra.gmra.mxu0 %vm125_vm2, %v1426_v32 }
 0xd6b   :  { %v1285_v33 = vpop.f32.mrf.mxu2 }
 0xd6c   :  { %2056 = vmatmul.msk.f32.gmra.mxu3 %vm125_vm2, %v1285_v33 }
 0xd70   :  { %2070 = vmatmul.msk.f32.vlgmr.msrb.gmra.mxu0 %vm125_vm2, %v1540_v34 }
 0xd73   :  { %v1399_v35 = vpop.f32.mrf.mxu2 }
 0xd74   :  { %v1403_v36 = vmul.f32 0.35355338, %v1399_v35 }
 0xd76   :  { %v1405_v37 = vadd.f32 %v1403_v36, %v2375_v38 }
 0xd78   :  { %v1409_v39 = vsel %vm125_vm2, %v1405_v37, -inf }
 0xd79   :  { %1410 = vmax.xlane.f32.xlu0 %v1409_v39 }
 0xd8d   :  { %1454 = vrot.lane.b32.xlu0 %v2580_v47, %s2230_s16 }
 0xda2   :  { %v2668_v41 = vpop.f32.mrf.mxu1 }
 0xdaa   :  { %v1536_v42 = vpop.f32.mrf.mxu1 }
 0xdab   :  { %v1567_v44 = vmul.f32 0.35355338, %v1536_v42 }
 0xdad   :  { %v1569_v46 = vadd.f32 %v1567_v44, %v2369_v27 }
 0xdaf   :  { %v1571_v48 = vsel %vm125_vm2, %v1569_v46, -inf }
 0xdb0   :  { %1572 = vmax.xlane.f32.xlu1 %v1571_v48 }
 0xde5   :  { %v1451_v50 = vpop.f32.mrf.mxu0 }
 0xde6   :  { %2065 = vmatmul.msk.f32.vlgmr.msra.gmra.mxu3 %vm125_vm2, %v1451_v50  ;;  %v2075_v50 = vld [vmem:[%s2817_s7 + $0x20] sm:$0xff] }
 0xdec   :  { %v1411_v51 = vpop.xlane.xlu0 %1410 }
 0xded   :  { %v1413_v52 = vsub.f32 %v1405_v37, %v1411_v51  ;;  %v1564_v54 = vpop.f32.mrf.mxu0 }
 0xdee   :  { %v1568_v13 = vmul.f32 0.35355338, %v1564_v54 }
 0xdef   :  { %v1416_v53 = vmul.f32 1.442695, %v1413_v52  ;;  %v1314_v23 = vpop.f32.mrf.mxu3 }
 0xdf0   :  { %v1570_v56 = vadd.f32 %v1568_v13, %v2375_v38  ;;  %v1344_v36 = vadd.f32 %v2668_v41, %v1314_v23  ;;  %v2078_v41 = vld [vmem:[%s2817_s7 + $0x38] sm:$0xff] }
 0xdf1   :  { %2171 = vpow2.f32 %v1416_v53 }
 0xdf2   :  { %v1574_v58 = vsel %vm125_vm2, %v1570_v56, -inf }
 0xdf7   :  { %v2172_v55 = vpop.eup %2171 }
 0xdf8   :  { %v1421_v27 = vsel %vm125_vm2, %v2172_v55, 0.0 }
 0xdf9   :  { %1422 = vadd.xlane.f32.xlu2 %v1421_v27 }
 0xdff   :  { %v1455_v57 = vpop.permute.xlu0 %1454 }
 0xe00   :  { %1475 = vmatpush.msra.mxu2 %v1455_v57 }
 0xe01   :  { %1575 = vmax.xlane.f32.xlu2 %v1574_v58 }
 0xe23   :  { %v1573_v45 = vpop.xlane.xlu1 %1572 }
 0xe24   :  { %v1577_v59 = vsub.f32 %v1569_v46, %v1573_v45 }
 0xe26   :  { %v1579_v60 = vmul.f32 1.442695, %v1577_v59 }
 0xe28   :  { %2173 = vpow2.f32 %v1579_v60 }
 0xe2e   :  { %v2174_v10 = vpop.eup %2173 }
 0xe2f   :  { %v1583_v63 = vsel %vm125_vm2, %v2174_v10, 0.0 }
 0xe30   :  { %1584 = vadd.xlane.f32.xlu2 %v1583_v63  ;;  %v1729_v63 = vperm.slane %v2569_v62, 2 }
 0xe48   :  { %1593 = vrot.lane.b32.xlu2 %v2572_v0, %s2231_s17 }
 0xe69   :  { %v1503_v24 = vpop.f32.mrf.mxu3 }
 0xe6a   :  { %v1509_v26 = vadd.f32 %v1503_v24, %v1341_v25 }
 0xe6c   :  { %v1423_v1 = vpop.xlane.xlu2 %1422 }
 0xe6d   :  { %2175 = vrcp.f32 %v1423_v1 }
 0xe73   :  { %v2176_v2 = vpop.eup %2175 }
 0xe74   :  { %v1427_v38 = vmul.f32 %v2176_v2, %v2172_v55  ;;  %v1576_v3 = vpop.xlane.xlu2 %1575 }
 0xe75   :  { %v1578_v4 = vsub.f32 %v1570_v56, %v1576_v3 }
 0xe76   :  { %2064 = vmatmul.msk.f32.vlgmr.msra.gmra.mxu2 %vm125_vm2, %v1427_v38  ;;  %v1732_v38 = vperm.slane %v2569_v62, 3 }
 0xe77   :  { %v1581_v12 = vmul.f32 1.442695, %v1578_v4 }
 0xe79   :  { %2177 = vpow2.f32 %v1581_v12 }
 0xe7f   :  { %v2178_v5 = vpop.eup %2177 }
 0xe80   :  { %v1586_v6 = vsel %vm125_vm2, %v2178_v5, 0.0 }
 0xe81   :  { %1587 = vadd.xlane.f32.xlu1 %v1586_v6  ;;  %v2088_v6 = vld [vmem:[%s2818_s8 + $0x78] sm:$0xff] }
 0xe82   :  { %1796 = vmatpush.msrb.mxu3 %v2088_v6 }
 0xe9a   :  { %1619 = vrot.lane.b32.xlu1 %v2580_v47, %s2231_s17  ;;  %v2040_v47 = vld [vmem:[%s2816_s6 + $0x38] sm:$0xff] }
 0xe9b   :  { %1666 = vmatpush.msra.mxu0 %v2040_v47 }
 0xea3   :  { %v1585_v8 = vpop.xlane.xlu2 %1584 }
 0xea4   :  { %2179 = vrcp.f32 %v1585_v8  ;;  %v2087_v8 = vld [vmem:[%s2818_s8 + $0x70] sm:$0xff] }
 0xea5   :  { %1797 = vmatpush.msrb.mxu3 %v2087_v8 }
 0xeaa   :  { %v2180_v0 = vpop.eup %2179 }
 0xeab   :  { %v1591_v9 = vmul.f32 %v2180_v0, %v2174_v10  ;;  %v1594_v11 = vpop.permute.xlu2 %1593 }
 0xeac   :  { %1614 = vmatpush.msrb.mxu2 %v1594_v11 }
 0xead   :  { %2071 = vmatmul.msk.f32.vlgmr.msrb.gmra.mxu2 %vm125_vm2, %v1591_v9 }
 0xeae   :  { %1759 = vmatpush.msra.mxu2 %v2078_v41 }
 0xef4   :  { %v1588_v15 = vpop.xlane.xlu1 %1587 }
 0xef5   :  { %2181 = vrcp.f32 %v1588_v15 }
 0xef9   :  { %v1477_v14 = vpop.f32.mrf.mxu2 }
 0xefa   :  { %2066 = vmatmul.msk.f32.gmra.mxu3 %vm125_vm2, %v1477_v14  ;;  %v2086_v14 = vld [vmem:[%s2818_s8 + $0x68] sm:$0xff] }
 0xefb   :  { %v2182_v16 = vpop.eup %2181  ;;  %1798 = vmatpush.msrb.mxu3 %v2086_v14 }
 0xefc   :  { %v1592_v17 = vmul.f32 %v2182_v16, %v2178_v5  ;;  %v2085_v16 = vld [vmem:[%s2818_s8 + $0x60] sm:$0xff] }
 0xefd   :  { %1799 = vmatpush.msrb.mxu3 %v2085_v16 }
 0xf0c   :  { %v1620_v19 = vpop.permute.xlu1 %1619 }
 0xf0d   :  { %1640 = vmatpush.msra.mxu1 %v1620_v19  ;;  %v2084_v19 = vld [vmem:[%s2818_s8 + $0x58] sm:$0xff] }
 0xf0e   :  { %2072 = vmatmul.msk.f32.vlgmr.msra.gmra.mxu1 %vm125_vm2, %v1592_v17  ;;  %1800 = vmatpush.msrb.mxu3 %v2084_v19 }
 0xf30   :  { %v1616_v20 = vpop.f32.mrf.mxu2 }
 0xf31   :  { %2073 = vmatmul.msk.f32.vlgmr.msra.gmra.mxu0 %vm125_vm2, %v1616_v20 }
 0xf7d   :  { %v1506_v35 = vpop.f32.mrf.mxu3 }
 0xf7e   :  { %v1510_v37 = vadd.f32 %v1506_v35, %v1344_v36 }
 0xf8b   :  { %v1642_v21 = vpop.f32.mrf.mxu1 }
 0xf8c   :  { %2074 = vmatmul.msk.f32.gmra.mxu0 %vm125_vm2, %v1642_v21 }
 0xfae   :  { %v1668_v28 = vpop.f32.mrf.mxu0 }
 0xfaf   :  { %v1674_v29 = vadd.f32 %v1668_v28, %v1509_v26 }
 0xfb1   :  { %v1676_v31 = vadd.f32 %v1674_v29, %v2556_v43 }
 0xfb3   :  { %v1679_v18 = vadd.f32 %v1678_v30, %v1676_v31  ;;  %v2083_v31 = vld [vmem:[%s2818_s8 + $0x50] sm:$0xff] }
 0xfb4   :  { %1801 = vmatpush.msrb.mxu3 %v2083_v31 }
 0xfb5   :  { %v1681_v32 = vsel %vm92_vm1, %v1679_v18, 0.0  ;;  %v1689_v33 = vmul.f32 %v1679_v18, %v1679_v18 }
 0xfb6   :  { %1682 = vadd.xlane.f32.xlu0 %v1681_v32  ;;  %v2081_v32 = vld [vmem:[%s2818_s8 + $0x40] sm:$0xff] }
 0xfb7   :  { %v1691_v34 = vsel %vm92_vm1, %v1689_v33, 0.0  ;;  %v1740_v33 = vperm.slane %v2569_v62, 4 }
 0xfb8   :  { %1692 = vadd.xlane.f32.xlu2 %v1691_v34 }
0x1009   :  { %v1671_v39 = vpop.f32.mrf.mxu0 }
0x100a   :  { %v1675_v40 = vadd.f32 %v1671_v39, %v1510_v37  ;;  %v2193_v37 = vld [vmem:[%s2810_s0] sm:$0x3] }
0x100b   :  { %v1868_v39 = vsel %vm1867_vm10, %v2193_v37, 0.0 }
0x100c   :  { %v1677_v42 = vadd.f32 %v1675_v40, %v2562_v61  ;;  %v2077_v61 = vld [vmem:[%s2817_s7 + $0x30] sm:$0xff]  ;;  %1869 = vadd.xlane.f32.xlu2 %v1868_v39 }
0x100d   :  { %1760 = vmatpush.msra.mxu2 %v2077_v61 }
0x100e   :  { %v2701_v44 = vadd.f32 %v1678_v30, %v1677_v42 }
0x100f   :  { %1761 = vmatpush.msra.mxu2 %v2076_v49 }
0x1010   :  { %v1684_v43 = vsel %vm92_vm1, %v2701_v44, 0.0  ;;  %v1690_v46 = vmul.f32 %v2701_v44, %v2701_v44 }
0x1011   :  { %1685 = vadd.xlane.f32.xlu1 %v1684_v43  ;;  %1762 = vmatpush.msra.mxu2 %v2075_v50  ;;  %v1781_v43 = vperm.slane %v2569_v62, 5 }
0x1012   :  { %v1694_v48 = vsel %vm92_vm1, %v1690_v46, 0.0 }
0x1013   :  { %1695 = vadd.xlane.f32.xlu0 %v1694_v48 }
0x1029   :  { %v1683_v51 = vpop.xlane.xlu0 %1682 }
0x102a   :  { %v1687_v52 = vmul.f32 %v1683_v51, %v2494_v7 }
0x102b   :  { %v1693_v53 = vpop.xlane.xlu2 %1692 }
0x102c   :  { %v1699_v54 = vmul.f32 %v1687_v52, %v1687_v52  ;;  %v1697_v55 = vmul.f32 %v1693_v53, %v2494_v7  ;;  %v1703_v10 = vsub.f32 %v1679_v18, %v1687_v52  ;;  %v2082_v18 = vld [vmem:[%s2818_s8 + $0x48] sm:$0xff] }
0x102d   :  { %1802 = vmatpush.msrb.mxu3 %v2082_v18 }
0x102e   :  { %v1701_v13 = vsub.f32 %v1697_v55, %v1699_v54 }
0x102f   :  { %1803 = vmatpush.msrb.mxu3 %v2081_v32  ;;  %v1861_v32 = vperm.slane %v2569_v62, 6 }
0x1030   :  { %v1705_v27 = vadd.f32 1e-05, %v1701_v13 }
0x1032   :  { %2183 = vrsqrt.f32 %v1705_v27  ;;  %vm1713_vm5 = vweird.f32 %v1705_v27 }
0x1038   :  { %v2184_v56 = vpop.eup %2183 }
0x1039   :  { %v1708_v57 = vmul.f32 %v2184_v56, %v1705_v27  ;;  %vm1714_vm2 = vweird.f32 %v2184_v56  ;;  %v1887_v27 = vlaneseq }
0x103a   :  { %vm1715_vm6 = vmor %vm1713_vm5, %vm1714_vm2 }
0x103b   :  { %v1709_v58 = vmul.f32 %v2184_v56, %v1708_v57  ;;  %v1888_v57 = vshrl.u32 %v1887_v27, 7 }
0x103d   :  { %v1710_v45 = vmul.f32 0.5, %v1709_v58  ;;  %2108 = vset.pattern.permute.xlu0 %v1888_v57  ;;  %2107 = vset.pattern.permute.xlu2 %v1888_v57 }
0x103f   :  { %v1711_v59 = vsub.f32 1.5, %v1710_v45 }
0x1041   :  { %v1712_v60 = vmul.f32 %v2184_v56, %v1711_v59 }
0x1043   :  { %v1716_v1 = vsel %vm1715_vm6, %v2184_v56, %v1712_v60 }
0x1044   :  { %v1727_v2 = vmul.f32 %v1716_v1, %v1703_v10 }
0x1046   :  { %v1730_v3 = vmul.f32 %v1729_v63, %v1727_v2 }
0x1048   :  { %v1733_v4 = vadd.f32 %v1732_v38, %v1730_v3 }
0x104a   :  { %2079 = vmatmul.msk.f32.vlgmr.msra.gmra.mxu2 %vm92_vm1, %v1733_v4 }
0x107f   :  { %v1870_v51 = vpop.xlane.xlu2 %1869 }
0x1080   :  { %v1882_v54 = vand.u32 2147483648, %v1870_v51  ;;  %v1880_v13 = vand.u32 2147483647, %v1870_v51 }
0x1082   :  { %v1883_v58 = vor.u32 1.1754944e-38, %v1882_v54  ;;  %vm1881_vm14 = vcmp.eq.f32.partialorder %v1880_v13, 8.507059e+37 }
0x1084   :  { %v1686_v12 = vpop.xlane.xlu1 %1685 }
0x1085   :  { %v1688_v5 = vmul.f32 %v1686_v12, %v2494_v7 }
0x1086   :  { %v1696_v0 = vpop.xlane.xlu0 %1695 }
0x1087   :  { %v1700_v9 = vmul.f32 %v1688_v5, %v1688_v5  ;;  %v1698_v11 = vmul.f32 %v1696_v0, %v2494_v7  ;;  %v1704_v25 = vsub.f32 %v2701_v44, %v1688_v5 }
0x1089   :  { %v1702_v15 = vsub.f32 %v1698_v11, %v1700_v9 }
0x108b   :  { %v1706_v17 = vadd.f32 1e-05, %v1702_v15 }
0x108d   :  { %2185 = vrsqrt.f32 %v1706_v17  ;;  %vm1723_vm8 = vweird.f32 %v1706_v17 }
0x108e   :  { %2187 = vrcp.f32 %v1870_v51 }
0x1093   :  { %v2186_v47 = vpop.eup %2185 }
0x1094   :  { %v1718_v20 = vmul.f32 %v2186_v47, %v1706_v17  ;;  %vm1724_vm7 = vweird.f32 %v2186_v47  ;;  %v2188_v52 = vpop.eup %2187 }
0x1095   :  { %vm1725_vm9 = vmor %vm1723_vm8, %vm1724_vm7  ;;  %v1872_v53 = vmul.f32 %v2188_v52, %v1870_v51  ;;  %vm1877_vm12 = vweird.f32 %v2188_v52  ;;  %vm1924_vm7 = vcmask 1041409  }
0x1096   :  { %v1719_v21 = vmul.f32 %v2186_v47, %v1718_v20 }
0x1097   :  { %v1873_v55 = vsub.f32 1.0, %v1872_v53 }
0x1098   :  { %v1720_v22 = vmul.f32 0.5, %v1719_v21 }
0x1099   :  { %v1874_v56 = vmul.f32 %v2188_v52, %v1873_v55 }
0x109a   :  { %v1721_v23 = vsub.f32 1.5, %v1720_v22 }
0x109b   :  { %v1875_v45 = vadd.f32 %v2188_v52, %v1874_v56 }
0x109c   :  { %v1722_v24 = vmul.f32 %v2186_v47, %v1721_v23 }
0x109e   :  { %v1726_v26 = vsel %vm1725_vm9, %v2186_v47, %v1722_v24 }
0x109f   :  { %v1728_v28 = vmul.f32 %v1726_v26, %v1704_v25 }
0x10a1   :  { %v1731_v29 = vmul.f32 %v1729_v63, %v1728_v28 }
0x10a3   :  { %v1734_v30 = vadd.f32 %v1732_v38, %v1731_v29 }
0x10a5   :  { %2080 = vmatmul.msk.f32.gmra.mxu2 %vm92_vm1, %v1734_v30 }
0x10cd   :  { %v1764_v34 = vpop.f32.mrf.mxu2 }
0x10ce   :  { %v1765_v35 = vadd.f32 %v1764_v34, %v1740_v33 }
0x10d0   :  { %v1770_v36 = vmax.f32 %v1765_v35, 0.0  ;;  %v1864_v35 = vperm.slane %v2569_v62, 7 }
0x10d2   :  { %2089 = vmatmul.msk.f32.vlgmr.msrb.gmra.mxu3 %vm894_vm11, %v1770_v36  ;;  %v1918_v36 = vld [vmem:[%s2819_s9 + $0x8] sm:$0xff] }
0x1128   :  { %v1767_v40 = vpop.f32.mrf.mxu2 }
0x1129   :  { %v1768_v42 = vadd.f32 %v1767_v40, %v1740_v33  ;;  %v1920_v33 = vld [vmem:[%s2819_s9 + $0x18] sm:$0xff] }
0x112a   :  { %1940 = vmatpush.msrb.mxu1 %v1920_v33 }
0x112b   :  { %v1771_v44 = vmax.f32 %v1768_v42, 0.0 }
0x112d   :  { %2090 = vmatmul.msk.f32.gmra.mxu3 %vm894_vm11, %v1771_v44  ;;  %vm1876_vm11 = vweird.f32 %v1870_v51 }
0x112e   :  { %vm1878_vm13 = vmor %vm1876_vm11, %vm1877_vm12 }
0x112f   :  { %v1879_v59 = vsel %vm1878_vm13, %v2188_v52, %v1875_v45 }
0x1130   :  { %v1884_v60 = vsel %vm1881_vm14, %v1883_v58, %v1879_v59 }
0x1131   :  { %v1885_v10 = vmul.f32 %v2193_v37, %v1884_v60  ;;  %v1917_v37 = vld [vmem:[%s2819_s9] sm:$0xff] }
0x1133   :  { %v1893_v63 = vperm.slane %v1885_v10, 1  ;;  %v1886_v5 = vperm.slane %v1885_v10, 0 }
0x1155   :  { %v1805_v46 = vpop.f32.mrf.mxu3 }
0x1156   :  { %v1806_v48 = vadd.f32 %v1805_v46, %v1781_v43 }
0x1158   :  { %v2760_v41 = vadd.f32 %v1806_v48, %v1733_v4 }
0x115a   :  { %v1813_v61 = vsel %vm92_vm1, %v2760_v41, 0.0  ;;  %v1821_v49 = vmul.f32 %v2760_v41, %v2760_v41 }
0x115b   :  { %1814 = vadd.xlane.f32.xlu0 %v1813_v61 }
0x115c   :  { %v1823_v50 = vsel %vm92_vm1, %v1821_v49, 0.0 }
0x1163   :  { %1824 = vadd.xlane.f32.xlu0 %v1823_v50 }
0x1177   :  { %1898 = vperm.xlu0 %2108, %v1893_v63  }
0x11b0   :  { %v1808_v1 = vpop.f32.mrf.mxu3 }
0x11b1   :  { %v1809_v2 = vadd.f32 %v1808_v1, %v1781_v43 }
0x11b3   :  { %v2767_v38 = vadd.f32 %v1809_v2, %v1734_v30 }
0x11b5   :  { %v1816_v3 = vsel %vm92_vm1, %v2767_v38, 0.0  ;;  %v1822_v4 = vmul.f32 %v2767_v38, %v2767_v38 }
0x11b6   :  { %1817 = vadd.xlane.f32.xlu2 %v1816_v3 }
0x11b7   :  { %v1826_v12 = vsel %vm92_vm1, %v1822_v4, 0.0  ;;  %v1950_v4 = vld [vmem:[%s2820_s10 + $0x8] sm:$0xff] }
0x11b8   :  { %1827 = vadd.xlane.f32.xlu1 %v1826_v12  ;;  %v1949_v12 = vld [vmem:[%s2820_s10] sm:$0xff] }
0x11ce   :  { %1891 = vperm.xlu2 %2107, %v1886_v5   ;;  %v1815_v6 = vpop.xlane.xlu0 %1814  ;;  %v1916_v5 = vld [vmem:[%s2821_s11] sm:$0x3] }
0x11cf   :  { %v1819_v0 = vmul.f32 %v1815_v6, %v2494_v7  ;;  %v1921_v6 = vperm.slane %v1916_v5, 0 }
0x11d1   :  { %v1831_v11 = vmul.f32 %v1819_v0, %v1819_v0  ;;  %v1835_v30 = vsub.f32 %v2760_v41, %v1819_v0 }
0x11d6   :  { %v1825_v8 = vpop.xlane.xlu0 %1824 }
0x11d7   :  { %v1829_v9 = vmul.f32 %v1825_v8, %v2494_v7 }
0x11d9   :  { %v1833_v14 = vsub.f32 %v1829_v9, %v1831_v11  ;;  %v1951_v11 = vperm.slane %v1916_v5, 1 }
0x11db   :  { %v1837_v15 = vadd.f32 1e-05, %v1833_v14 }
0x11dd   :  { %2189 = vrsqrt.f32 %v1837_v15  ;;  %vm1845_vm3 = vweird.f32 %v1837_v15 }
0x11e3   :  { %v2190_v16 = vpop.eup %2189 }
0x11e4   :  { %v1840_v17 = vmul.f32 %v2190_v16, %v1837_v15  ;;  %vm1846_vm15 = vweird.f32 %v2190_v16 }
0x11e5   :  { %vm1847_vm4 = vmor %vm1845_vm3, %vm1846_vm15 }
0x11e6   :  { %v1841_v19 = vmul.f32 %v2190_v16, %v1840_v17 }
0x11e8   :  { %v1842_v47 = vmul.f32 0.5, %v1841_v19 }
0x11e9   :  { %v1899_v13 = vpop.permute.xlu0 %1898 }
0x11ea   :  { %v1843_v20 = vsub.f32 1.5, %v1842_v47 }
0x11ec   :  { %v1844_v24 = vmul.f32 %v2190_v16, %v1843_v20 }
0x11ee   :  { %v1848_v29 = vsel %vm1847_vm4, %v2190_v16, %v1844_v24 }
0x11ef   :  { %v1859_v18 = vmul.f32 %v1848_v29, %v1835_v30 }
0x11f1   :  { %v1862_v34 = vmul.f32 %v1861_v32, %v1859_v18 }
0x11f3   :  { %v1865_v44 = vadd.f32 %v1864_v35, %v1862_v34 }
0x1229   :  { %v1818_v21 = vpop.xlane.xlu2 %1817 }
0x122a   :  { %v1820_v22 = vmul.f32 %v1818_v21, %v2494_v7 }
0x122b   :  { %v1828_v23 = vpop.xlane.xlu1 %1827 }
0x122c   :  { %v1832_v25 = vmul.f32 %v1820_v22, %v1820_v22  ;;  %v1830_v26 = vmul.f32 %v1828_v23, %v2494_v7  ;;  %v1919_v7 = vld [vmem:[%s2819_s9 + $0x10] sm:$0xff]  ;;  %v1836_v49 = vsub.f32 %v2767_v38, %v1820_v22 }
0x122d   :  { %1941 = vmatpush.msrb.mxu1 %v1919_v7 }
0x122e   :  { %v1834_v28 = vsub.f32 %v1830_v26, %v1832_v25 }
0x122f   :  { %1942 = vmatpush.msrb.mxu1 %v1918_v36 }
0x1230   :  { %v1838_v31 = vadd.f32 1e-05, %v1834_v28 }
0x1231   :  { %v1892_v42 = vpop.permute.xlu2 %1891  ;;  %1943 = vmatpush.msrb.mxu1 %v1917_v37 }
0x1232   :  { %2191 = vrsqrt.f32 %v1838_v31  ;;  %v1900_v46 = vmul.f32 %v1892_v42, %v1865_v44  ;;  %vm1855_vm5 = vweird.f32 %v1838_v31 }
0x1233   :  { %1969 = vmatpush.msra.mxu1 %v1950_v4 }
0x1234   :  { %v1902_v62 = vsel %vm92_vm1, %v1900_v46, 0.0 }
0x1235   :  { %v1903_v50 = vrot.slane %v1902_v62, 4  ;;  %1970 = vmatpush.msra.mxu1 %v1949_v12 }
0x1237   :  { %v1904_v54 = vadd.f32 %v1903_v50, %v1902_v62 }
0x1238   :  { %v2192_v39 = vpop.eup %2191 }
0x1239   :  { %v1850_v40 = vmul.f32 %v2192_v39, %v1838_v31  ;;  %vm1856_vm2 = vweird.f32 %v2192_v39  ;;  %v1905_v56 = vrot.slane %v1904_v54, 2 }
0x123a   :  { %vm1857_vm6 = vmor %vm1855_vm5, %vm1856_vm2 }
0x123b   :  { %v1851_v43 = vmul.f32 %v2192_v39, %v1850_v40  ;;  %v1906_v45 = vadd.f32 %v1905_v56, %v1904_v54 }
0x123d   :  { %v1852_v48 = vmul.f32 0.5, %v1851_v43  ;;  %v1907_v10 = vrot.slane %v1906_v45, 1 }
0x123f   :  { %v1853_v41 = vsub.f32 1.5, %v1852_v48  ;;  %v1908_v2 = vadd.f32 %v1907_v10, %v1906_v45 }
0x1241   :  { %v1854_v61 = vmul.f32 %v2192_v39, %v1853_v41 }
0x1243   :  { %v1858_v51 = vsel %vm1857_vm6, %v2192_v39, %v1854_v61 }
0x1244   :  { %v1860_v52 = vmul.f32 %v1858_v51, %v1836_v49 }
0x1246   :  { %v1863_v53 = vmul.f32 %v1861_v32, %v1860_v52 }
0x1248   :  { %v1866_v55 = vadd.f32 %v1864_v35, %v1863_v53 }
0x124a   :  { %v1901_v27 = vmul.f32 %v1899_v13, %v1866_v55 }
0x124c   :  { %v1909_v57 = vsel %vm92_vm1, %v1901_v27, 0.0 }
0x124d   :  { %v1910_v58 = vrot.slane %v1909_v57, 4 }
0x124f   :  { %v1911_v59 = vadd.f32 %v1910_v58, %v1909_v57 }
0x1251   :  { %v1912_v60 = vrot.slane %v1911_v59, 2 }
0x1253   :  { %v1913_v63 = vadd.f32 %v1912_v60, %v1911_v59 }
0x1255   :  { %v1914_v1 = vrot.slane %v1913_v63, 1 }
0x1257   :  { %v1915_v38 = vadd.f32 %v1914_v1, %v1913_v63 }
0x1259   :  { %v1925_v3 = vsel %vm1924_vm7, %v1915_v38, %v1908_v2 }
0x125a   :  { %2091 = vmatmul.msk.f32.vlgmr.msrb.gmra.mxu1 %vm92_vm1, %v1925_v3 }
0x12d7   :  { %v1945_v8 = vpop.f32.mrf.mxu1 }
0x12d8   :  { %v1946_v0 = vadd.f32 %v1945_v8, %v1921_v6 }
0x12da   :  { %v1948_v9 = vmax.f32 %v1946_v0, 0.0 }
0x12dc   :  { %2092 = vmatmul.msk.f32.vlgmr.msra.gmra.mxu1 %vm49_vm0, %v1948_v9 }
0x1359   :  { %v1972_v14 = vpop.f32.mrf.mxu1 }
0x135a   :  { %v1973_v15 = vadd.f32 %v1972_v14, %v1951_v11 }
0x135c   :  { %1975 = vst [vmem:[#allocation2] sm:$0x3] %v1973_v15 }
0x135d   :  { %1986 = dma.vmem_to_hbm [thread:$0]  %s1982_s24, 32, %s1984_s30, [#allocation3]  }
0x135e   :  { %2218 = dma.done.wait [#allocation3], 32  }
0x135f   :  { %2219 = vsyncadd [#allocation3], 4294967264 }
0x1360   :  { %1991 = vsyncpa [#allocation3], 1 }

</bundles_post_ra>
